<compile_context>
chip_gen: v7x
topology: tpu7x:2x2x1
jax: 0.10.0
libtpu: 0.0.40
codegen_flags: <defaults>
</compile_context>

<pallas_src>
import functools

import jax
import jax.numpy as jnp
from jax import lax
from jax.experimental import pallas as pl
from jax.experimental.pallas import tpu as pltpu


def _round_up(a, b):
    return (a + b - 1) // b * b


def _cdiv(a, b):
    return (a + b - 1) // b


def _compiler_params():
    cp_cls = getattr(pltpu, "CompilerParams", None) or getattr(pltpu, "TPUCompilerParams")
    return cp_cls(dimension_semantics=("parallel", "parallel"),
                  vmem_limit_bytes=32 * 1024 * 1024)


# ---------------------------------------------------------------------------
# Shared helpers (run inside the kernels; everything is static slicing).
# ---------------------------------------------------------------------------
def _fill_window(xw_ref, x_ref, xh_ref, tile):
    # Assemble the (s2, Cin, tile + halo) input window once per grid step:
    # main block + cross-tile halo.  Both stores are 128-aligned static slices.
    xw_ref[:, :, :tile] = x_ref[0]
    xw_ref[:, :, tile:] = xh_ref[0]


def _conv_chunk(xw_ref, w_ref, c0, sub, taps, cout):
    # (Cout, sub) = sum over taps of W_tap @ window[phase, :, c0+off : +sub]
    # taps = tuple of (weight_index, phase, static lane offset).
    acc = jnp.zeros((cout, sub), dtype=jnp.float32)
    for widx, phase, off in taps:
        xs = xw_ref[phase, :, c0 + off:c0 + off + sub]          # (Cin, sub) bf16
        acc = acc + jnp.dot(w_ref[widx], xs,
                            preferred_element_type=jnp.float32)
    return acc


# ---------------------------------------------------------------------------
# Pass 1: conv (in-register im2col) -> masked partial BN statistics only.
# ---------------------------------------------------------------------------
def _conv_stats_kernel(x_ref, xh_ref, w_ref, mask_ref, stats_ref, xw_ref, *,
                       taps, cout, tile, sub, nsub):
    _fill_window(xw_ref, x_ref, xh_ref, tile)
    ssum = jnp.zeros((cout, 1), dtype=jnp.float32)
    ssq = jnp.zeros((cout, 1), dtype=jnp.float32)
    for si in range(nsub):
        c0 = si * sub
        acc = _conv_chunk(xw_ref, w_ref, c0, sub, taps, cout)   # (Cout, sub) f32
        msk = mask_ref[:, c0:c0 + sub]                          # (1, sub): 1 valid / 0 pad
        am = acc * msk
        ssum = ssum + jnp.sum(am, axis=1, keepdims=True)
        ssq = ssq + jnp.sum(am * acc, axis=1, keepdims=True)
    # Single merged stats block per grid step.
    stats_ref[0, 0, :, 0:1] = ssum
    stats_ref[0, 0, :, 1:2] = ssq


# ---------------------------------------------------------------------------
# Pass 2: recompute conv, fused BN finalize + Bias2d + LeakyReLU (f32 epilogue).
# ---------------------------------------------------------------------------
def _conv_bn_lrelu_kernel(x_ref, xh_ref, w_ref, stats_ref, b2_ref, o_ref,
                          xw_ref, *, taps, cout, tile, sub, nsub, inv_m, eps,
                          slope):
    _fill_window(xw_ref, x_ref, xh_ref, tile)
    # Tiny (Cout,)-sized finalize; stats are resident across the whole grid.
    # Note: E[x^2]-E[x]^2 is safe here (conv bias dropped, near zero-mean).
    tot = jnp.sum(stats_ref[...], axis=(0, 1))                  # (Cout, 2)
    mean = tot[:, 0:1] * inv_m
    var = jnp.maximum(tot[:, 1:2] * inv_m - mean * mean, 0.0)
    scale = lax.rsqrt(var + eps)                                # (Cout, 1)
    shift = b2_ref[...] - mean * scale                          # (Cout, 1)
    for si in range(nsub):
        c0 = si * sub
        acc = _conv_chunk(xw_ref, w_ref, c0, sub, taps, cout)
        y = acc * scale + shift
        o_ref[0, :, c0:c0 + sub] = jnp.where(y >= 0, y, slope * y)


# ---------------------------------------------------------------------------
# Wrapper.
# ---------------------------------------------------------------------------
@functools.partial(
    jax.jit,
    static_argnames=("kernel_size", "stride", "padding", "tile", "sub_tile",
                     "compute_dtype"))
def leaky_relu_bnns_conv2d(x, conv_w, conv_b, bias2d_b, *, kernel_size, stride,
                           padding=0, tile=8192, sub_tile=1024,
                           compute_dtype=jnp.bfloat16):
    """Forward pass of LeakyReLUBNNSConv2d.

    x:        (N, Cin, H, W)       NCHW, like PyTorch
    conv_w:   (Cout, Cin, kh, kw)  PyTorch Conv2d weight layout
    conv_b:   (Cout,)              accepted for API parity (cancels through BN)
    bias2d_b: (Cout,)
    returns:  (N, Cout, Ho, Wo)    NCHW, float32
    """
    # BatchNorm2d(affine=False) right after the conv subtracts the per-channel
    # batch mean, so a constant per-channel conv bias cancels exactly.
    del conv_b

    n, cin, h, w = x.shape
    cout = conv_w.shape[0]
    k, s, p = int(kernel_size), int(stride), int(padding)
    hp, wp = h + 2 * p, w + 2 * p
    assert hp >= k and wp >= k, "kernel larger than padded input"
    ho = (hp - k) // s + 1
    wo = (wp - k) // s + 1

    # Polyphase decomposition of the padded input: phase (ri, rj) holds
    # x_pad[:, :, ri::s, rj::s].  Conv tap (i, j) then reads phase
    # (i % s)*s + (j % s) at a CONSTANT flat offset (i//s)*Wq + (j//s) relative
    # to the flattened output position -> in-kernel im2col via static slices.
    # Columns wo..Wq-1 of each output row are garbage (row wrap) and are
    # masked out of the statistics and stripped at the end.
    s2 = s * s
    hq = _cdiv(hp, s)
    wq = _cdiv(wp, s)
    l = ho * wq                                  # flattened per-image output axis
    max_off = ((k - 1) // s) * wq + ((k - 1) // s)
    halo = max(128, _round_up(max_off, 128))

    # Lane tiling: large grid tiles (amortize per-step overhead), small inner
    # compute sub-tiles (register pressure).  All multiples of 128 lanes.
    sub = max(128, min(_round_up(sub_tile, 128), _round_up(l, 128)))
    cap = _round_up(l, sub)
    tile_eff = min(max(sub, (min(int(tile), cap) // sub) * sub), cap)
    nt = _cdiv(l, tile_eff)
    if n * nt < 2 and tile_eff > sub:            # keep >=2 grid steps (v7x megacore)
        tile_eff = max(sub, (tile_eff // 2 // sub) * sub)
        nt = _cdiv(l, tile_eff)
    l_pad = nt * tile_eff
    nsub = tile_eff // sub

    # ---- XLA prep: O(|x|) only (no kh*kw expansion) -------------------------
    xp = jnp.pad(x, ((0, 0), (0, 0), (p, p), (p, p)))
    phases = []
    for ri in range(s):
        for rj in range(s):
            ph = xp[:, :, ri::s, rj::s]
            ph = jnp.pad(ph, ((0, 0), (0, 0),
                              (0, hq - ph.shape[2]), (0, wq - ph.shape[3])))
            phases.append(ph)
    xph = jnp.stack(phases, axis=1)                              # (N, s2, Cin, Hq, Wq)
    flat = xph.reshape(n, s2, cin, hq * wq).astype(compute_dtype)
    ext_len = max(hq * wq, l_pad + halo)
    ext = jnp.pad(flat, ((0, 0), (0, 0), (0, 0), (0, ext_len - hq * wq)))
    x_main = ext[..., :l_pad]                                    # (N, s2, Cin, L_pad)
    x_halo = jnp.concatenate(
        [ext[..., (t + 1) * tile_eff:(t + 1) * tile_eff + halo] for t in range(nt)],
        axis=-1)                                                 # (N, s2, Cin, nt*halo)

    pos = jnp.arange(l_pad, dtype=jnp.int32)
    mask = (((pos % wq) < wo) & (pos < l)).astype(jnp.float32).reshape(1, l_pad)

    # (Cout, Cin, kh, kw) -> (kh*kw, Cout, Cin); tap widx = i*kw + j.
    wk = jnp.transpose(conv_w, (2, 3, 0, 1)).reshape(k * k, cout, cin)
    wk = wk.astype(compute_dtype)
    b2 = bias2d_b.astype(jnp.float32).reshape(cout, 1)

    taps = tuple((i * k + j, (i % s) * s + (j % s), (i // s) * wq + (j // s))
                 for i in range(k) for j in range(k))
    m_true = n * ho * wo
    cparams = _compiler_params()

    x_spec = pl.BlockSpec((1, s2, cin, tile_eff), lambda b, t: (b, 0, 0, t))
    halo_spec = pl.BlockSpec((1, s2, cin, halo), lambda b, t: (b, 0, 0, t))
    w_spec = pl.BlockSpec((k * k, cout, cin), lambda b, t: (0, 0, 0))
    window_scratch = pltpu.VMEM((s2, cin, tile_eff + halo), compute_dtype)

    # ---- Pass 1: masked partial BN statistics (tiny output, no conv in HBM) --
    stats = pl.pallas_call(
        functools.partial(_conv_stats_kernel, taps=taps, cout=cout,
                          tile=tile_eff, sub=sub, nsub=nsub),
        grid=(n, nt),
        in_specs=[x_spec, halo_spec, w_spec,
                  pl.BlockSpec((1, tile_eff), lambda b, t: (0, t))],
        out_specs=pl.BlockSpec((1, 1, cout, 2), lambda b, t: (b, t, 0, 0)),
        out_shape=jax.ShapeDtypeStruct((n, nt, cout, 2), jnp.float32),
        scratch_shapes=[window_scratch],
        compiler_params=cparams,
    )(x_main, x_halo, wk, mask)

    # ---- Pass 2: recompute conv, fused BN + Bias2d + LeakyReLU ---------------
    out_flat = pl.pallas_call(
        functools.partial(_conv_bn_lrelu_kernel, taps=taps, cout=cout,
                          tile=tile_eff, sub=sub, nsub=nsub,
                          inv_m=1.0 / float(m_true), eps=1e-5, slope=0.01),
        grid=(n, nt),
        in_specs=[x_spec, halo_spec, w_spec,
                  pl.BlockSpec((n, nt, cout, 2), lambda b, t: (0, 0, 0, 0)),
                  pl.BlockSpec((cout, 1), lambda b, t: (0, 0))],
        out_specs=pl.BlockSpec((1, cout, tile_eff), lambda b, t: (b, 0, t)),
        out_shape=jax.ShapeDtypeStruct((n, cout, l_pad), jnp.float32),
        scratch_shapes=[window_scratch],
        compiler_params=cparams,
    )(x_main, x_halo, wk, stats, b2)

    # Strip per-row garbage columns + lane tail; NCHW is then a free reshape.
    out = out_flat[:, :, :l].reshape(n, cout, ho, wq)[:, :, :, :wo]
    return out


# ---------------------------------------------------------------------------
# Pure-JAX reference (for correctness checks).
# ---------------------------------------------------------------------------
def _reference(x, conv_w, conv_b, bias2d_b, *, stride, padding,
               compute_dtype=jnp.float32):
    xq = x.astype(compute_dtype).astype(jnp.float32)
    wq_ = conv_w.astype(compute_dtype).astype(jnp.float32)
    y = lax.conv_general_dilated(
        xq, wq_, window_strides=(stride, stride),
        padding=[(padding, padding), (padding, padding)],
        dimension_numbers=("NCHW", "OIHW", "NCHW"),
        precision=lax.Precision.HIGHEST,
    ) + conv_b.reshape(1, -1, 1, 1).astype(jnp.float32)
    mean = jnp.mean(y, axis=(0, 2, 3), keepdims=True)
    var = jnp.mean((y - mean) ** 2, axis=(0, 2, 3), keepdims=True)
    yn = (y - mean) * lax.rsqrt(var + 1e-5)
    yb = yn + bias2d_b.reshape(1, -1, 1, 1).astype(jnp.float32)
    return jnp.where(yb >= 0, yb, 0.01 * yb)


if __name__ == "__main__":
    # Module config: n_in=4, n_out=8, kernel_size=3, stride=1, padding=1
    n_in, n_out, kernel_size = 4, 8, 3
    N, H, W = 2, 16, 16

    key = jax.random.PRNGKey(0)
    kx, kwt, kb, kb2 = jax.random.split(key, 4)

    x = jax.random.normal(kx, (N, n_in, H, W), dtype=jnp.float32)
    # gaussian_weights_init: conv weight ~ N(0, 0.02)
    conv_w = 0.02 * jax.random.normal(
        kwt, (n_out, n_in, kernel_size, kernel_size), dtype=jnp.float32)
    # PyTorch Conv2d bias default: U(-1/sqrt(fan_in), 1/sqrt(fan_in))
    fan_in = n_in * kernel_size * kernel_size
    bound = 1.0 / (fan_in ** 0.5)
    conv_b = jax.random.uniform(kb, (n_out,), minval=-bound, maxval=bound,
                                dtype=jnp.float32)
    # Bias2d.reset_parameters: bias ~ N(0, 0.002)
    bias2d_b = 0.002 * jax.random.normal(kb2, (n_out,), dtype=jnp.float32)

    def check(out, stride, padding, shape):
        assert out.shape == shape, out.shape
        # Primary check: reference with matching bf16-quantized conv operands
        # (the kernel accumulates the matmul in f32) -> tight tolerance.
        ref_m = _reference(x, conv_w, conv_b, bias2d_b, stride=stride,
                           padding=padding, compute_dtype=jnp.bfloat16)
        err = float(jnp.max(jnp.abs(out - ref_m)))
        assert err < 2e-3, err
        # Sanity vs the full-f32 reference (bf16 conv inputs cost ~1e-2 after
        # BN normalization at these magnitudes).
        ref_f = _reference(x, conv_w, conv_b, bias2d_b, stride=stride,
                           padding=padding, compute_dtype=jnp.float32)
        err32 = float(jnp.max(jnp.abs(out - ref_f)))
        assert err32 < 5e-2, err32

    out = leaky_relu_bnns_conv2d(x, conv_w, conv_b, bias2d_b,
                                 kernel_size=kernel_size, stride=1, padding=1)
    out = jax.block_until_ready(out)
    check(out, 1, 1, (N, n_out, H, W))

    # Small-tile rerun: exercises the multi-tile grid + cross-tile halo path.
    out_small = leaky_relu_bnns_conv2d(x, conv_w, conv_b, bias2d_b,
                                       kernel_size=kernel_size, stride=1,
                                       padding=1, tile=128, sub_tile=128)
    out_small = jax.block_until_ready(out_small)
    check(out_small, 1, 1, (N, n_out, H, W))

    # Strided config: exercises the polyphase (stride > 1) path.
    out_s2 = leaky_relu_bnns_conv2d(x, conv_w, conv_b, bias2d_b,
                                    kernel_size=kernel_size, stride=2,
                                    padding=1)
    out_s2 = jax.block_until_ready(out_s2)
    check(out_s2, 2, 1, (N, n_out, 8, 8))

    print("KERNEL_OK")
</pallas_src>

<mosaic_0001>
module attributes {stable_mosaic.version = 11 : i64} {
  func.func @_conv_bn_lrelu_kernel(%arg0: i32, %arg1: i32, %arg2: memref<1x1x4x384xbf16, #tpu.memory_space<vmem>>, %arg3: memref<1x1x4x128xbf16, #tpu.memory_space<vmem>>, %arg4: memref<9x8x4xbf16, #tpu.memory_space<vmem>>, %arg5: memref<2x1x8x2xf32, #tpu.memory_space<vmem>>, %arg6: memref<8x1xf32, #tpu.memory_space<vmem>>, %arg7: memref<1x8x384xf32, #tpu.memory_space<vmem>>, %arg8: memref<1x4x512xbf16, #tpu.memory_space<vmem>>) attributes {dimension_semantics = [#tpu.dimension_semantics<parallel>, #tpu.dimension_semantics<parallel>], iteration_bounds = array<i64: 2, 1>, scalar_prefetch = 0 : i64, scratch_operands = 1 : i64, tpu.core_type = #tpu.core_type<tc>, window_params = [{transform_indices = @transform_0, window_bounds = array<i64: 1, 1, 4, 384>}, {transform_indices = @transform_1, window_bounds = array<i64: 1, 1, 4, 128>}, {pipeline_mode = #tpu.pipeline_mode<synchronous>, transform_indices = @transform_2, window_bounds = array<i64: 9, 8, 4>}, {pipeline_mode = #tpu.pipeline_mode<synchronous>, transform_indices = @transform_3, window_bounds = array<i64: 2, 1, 8, 2>}, {pipeline_mode = #tpu.pipeline_mode<synchronous>, transform_indices = @transform_4, window_bounds = array<i64: 8, 1>}, {transform_indices = @transform_5, window_bounds = array<i64: 1, 8, 384>}]} {
    %c0 = arith.constant 0 : index
    %c0_0 = arith.constant 0 : index
    %c0_1 = arith.constant 0 : index
    %c0_2 = arith.constant 0 : index
    %0 = vector.load %arg2[%c0, %c0_0, %c0_1, %c0_2] : memref<1x1x4x384xbf16, #tpu.memory_space<vmem>>, vector<1x1x4x384xbf16>
    %1 = vector.shape_cast %0 : vector<1x1x4x384xbf16> to vector<1x4x384xbf16>
    %c0_3 = arith.constant 0 : index
    %c0_4 = arith.constant 0 : index
    %c0_5 = arith.constant 0 : index
    %2 = vector.load %arg8[%c0_3, %c0_4, %c0_5] : memref<1x4x512xbf16, #tpu.memory_space<vmem>>, vector<1x4x384xbf16>
    tpu.vector_store %arg8[%c0_3, %c0_4, %c0_5], %1 {strides = array<i32>} : memref<1x4x512xbf16, #tpu.memory_space<vmem>>, vector<1x4x384xbf16>,
    %c0_6 = arith.constant 0 : index
    %c0_7 = arith.constant 0 : index
    %c0_8 = arith.constant 0 : index
    %c0_9 = arith.constant 0 : index
    %3 = vector.load %arg3[%c0_6, %c0_7, %c0_8, %c0_9] : memref<1x1x4x128xbf16, #tpu.memory_space<vmem>>, vector<1x1x4x128xbf16>
    %4 = vector.shape_cast %3 : vector<1x1x4x128xbf16> to vector<1x4x128xbf16>
    %c0_10 = arith.constant 0 : index
    %c0_11 = arith.constant 0 : index
    %c384 = arith.constant 384 : index
    %5 = vector.load %arg8[%c0_10, %c0_11, %c384] : memref<1x4x512xbf16, #tpu.memory_space<vmem>>, vector<1x4x128xbf16>
    tpu.vector_store %arg8[%c0_10, %c0_11, %c384], %4 {strides = array<i32>} : memref<1x4x512xbf16, #tpu.memory_space<vmem>>, vector<1x4x128xbf16>,
    %c0_12 = arith.constant 0 : index
    %c0_13 = arith.constant 0 : index
    %c0_14 = arith.constant 0 : index
    %c0_15 = arith.constant 0 : index
    %6 = vector.load %arg5[%c0_12, %c0_13, %c0_14, %c0_15] : memref<2x1x8x2xf32, #tpu.memory_space<vmem>>, vector<2x1x8x2xf32>
    %cst = arith.constant dense<0.000000e+00> : vector<8x2xf32>
    %7 = vector.multi_reduction <add>, %6, %cst [0, 1] : vector<2x1x8x2xf32> to vector<8x2xf32>
    %8 = vector.extract_strided_slice %7 {offsets = [0, 0], sizes = [8, 1], strides = [1, 1]} : vector<8x2xf32> to vector<8x1xf32>
    %cst_16 = arith.constant 0.001953125 : f32
    %9 = vector.broadcast %cst_16 : f32 to vector<8x1xf32>
    %10 = arith.mulf %8, %9 : vector<8x1xf32>
    %11 = vector.extract_strided_slice %7 {offsets = [0, 1], sizes = [8, 1], strides = [1, 1]} : vector<8x2xf32> to vector<8x1xf32>
    %cst_17 = arith.constant 0.001953125 : f32
    %12 = vector.broadcast %cst_17 : f32 to vector<8x1xf32>
    %13 = arith.mulf %11, %12 : vector<8x1xf32>
    %14 = arith.mulf %10, %10 : vector<8x1xf32>
    %15 = arith.subf %13, %14 : vector<8x1xf32>
    %cst_18 = arith.constant 0.000000e+00 : f32
    %16 = vector.broadcast %cst_18 : f32 to vector<8x1xf32>
    %17 = arith.maximumf %15, %16 : vector<8x1xf32>
    %cst_19 = arith.constant 9.99999974E-6 : f32
    %18 = vector.broadcast %cst_19 : f32 to vector<8x1xf32>
    %19 = arith.addf %17, %18 : vector<8x1xf32>
    %20 = math.rsqrt %19 : vector<8x1xf32>
    %c0_20 = arith.constant 0 : index
    %c0_21 = arith.constant 0 : index
    %21 = vector.load %arg6[%c0_20, %c0_21] : memref<8x1xf32, #tpu.memory_space<vmem>>, vector<8x1xf32>
    %22 = arith.mulf %10, %20 : vector<8x1xf32>
    %23 = arith.subf %21, %22 : vector<8x1xf32>
    %cst_22 = arith.constant 0.000000e+00 : f32
    %24 = vector.broadcast %cst_22 : f32 to vector<8x384xf32>
    %c0_23 = arith.constant 0 : index
    %c0_24 = arith.constant 0 : index
    %c0_25 = arith.constant 0 : index
    %25 = vector.load %arg8[%c0_23, %c0_24, %c0_25] : memref<1x4x512xbf16, #tpu.memory_space<vmem>>, vector<1x4x384xbf16>
    %26 = vector.shape_cast %25 : vector<1x4x384xbf16> to vector<4x384xbf16>
    %c0_26 = arith.constant 0 : index
    %c0_27 = arith.constant 0 : index
    %c0_28 = arith.constant 0 : index
    %27 = vector.load %arg4[%c0_26, %c0_27, %c0_28] : memref<9x8x4xbf16, #tpu.memory_space<vmem>>, vector<1x8x4xbf16>
    %28 = vector.shape_cast %27 : vector<1x8x4xbf16> to vector<8x4xbf16>
    %cst_29 = arith.constant dense<0.000000e+00> : vector<8x384xf32>
    %29 = tpu.matmul %28, %26, %cst_29 {dimension_numbers = #tpu.dot_dimension_numbers<[1], [0], [0], [1], [0, 0, 1, 1], [], []>} : vector<8x4xbf16>, vector<4x384xbf16>, vector<8x384xf32> -> vector<8x384xf32>
    %30 = arith.addf %24, %29 : vector<8x384xf32>
    %c0_30 = arith.constant 0 : index
    %c0_31 = arith.constant 0 : index
    %c1 = arith.constant 1 : index
    %31 = vector.load %arg8[%c0_30, %c0_31, %c1] : memref<1x4x512xbf16, #tpu.memory_space<vmem>>, vector<1x4x384xbf16>
    %32 = vector.shape_cast %31 : vector<1x4x384xbf16> to vector<4x384xbf16>
    %c1_32 = arith.constant 1 : index
    %c0_33 = arith.constant 0 : index
    %c0_34 = arith.constant 0 : index
    %33 = vector.load %arg4[%c1_32, %c0_33, %c0_34] : memref<9x8x4xbf16, #tpu.memory_space<vmem>>, vector<1x8x4xbf16>
    %34 = vector.shape_cast %33 : vector<1x8x4xbf16> to vector<8x4xbf16>
    %cst_35 = arith.constant dense<0.000000e+00> : vector<8x384xf32>
    %35 = tpu.matmul %34, %32, %cst_35 {dimension_numbers = #tpu.dot_dimension_numbers<[1], [0], [0], [1], [0, 0, 1, 1], [], []>} : vector<8x4xbf16>, vector<4x384xbf16>, vector<8x384xf32> -> vector<8x384xf32>
    %36 = arith.addf %30, %35 : vector<8x384xf32>
    %c0_36 = arith.constant 0 : index
    %c0_37 = arith.constant 0 : index
    %c2 = arith.constant 2 : index
    %37 = vector.load %arg8[%c0_36, %c0_37, %c2] : memref<1x4x512xbf16, #tpu.memory_space<vmem>>, vector<1x4x384xbf16>
    %38 = vector.shape_cast %37 : vector<1x4x384xbf16> to vector<4x384xbf16>
    %c2_38 = arith.constant 2 : index
    %c0_39 = arith.constant 0 : index
    %c0_40 = arith.constant 0 : index
    %39 = vector.load %arg4[%c2_38, %c0_39, %c0_40] : memref<9x8x4xbf16, #tpu.memory_space<vmem>>, vector<1x8x4xbf16>
    %40 = vector.shape_cast %39 : vector<1x8x4xbf16> to vector<8x4xbf16>
    %cst_41 = arith.constant dense<0.000000e+00> : vector<8x384xf32>
    %41 = tpu.matmul %40, %38, %cst_41 {dimension_numbers = #tpu.dot_dimension_numbers<[1], [0], [0], [1], [0, 0, 1, 1], [], []>} : vector<8x4xbf16>, vector<4x384xbf16>, vector<8x384xf32> -> vector<8x384xf32>
    %42 = arith.addf %36, %41 : vector<8x384xf32>
    %c0_42 = arith.constant 0 : index
    %c0_43 = arith.constant 0 : index
    %c18 = arith.constant 18 : index
    %43 = vector.load %arg8[%c0_42, %c0_43, %c18] : memref<1x4x512xbf16, #tpu.memory_space<vmem>>, vector<1x4x384xbf16>
    %44 = vector.shape_cast %43 : vector<1x4x384xbf16> to vector<4x384xbf16>
    %c3 = arith.constant 3 : index
    %c0_44 = arith.constant 0 : index
    %c0_45 = arith.constant 0 : index
    %45 = vector.load %arg4[%c3, %c0_44, %c0_45] : memref<9x8x4xbf16, #tpu.memory_space<vmem>>, vector<1x8x4xbf16>
    %46 = vector.shape_cast %45 : vector<1x8x4xbf16> to vector<8x4xbf16>
    %cst_46 = arith.constant dense<0.000000e+00> : vector<8x384xf32>
    %47 = tpu.matmul %46, %44, %cst_46 {dimension_numbers = #tpu.dot_dimension_numbers<[1], [0], [0], [1], [0, 0, 1, 1], [], []>} : vector<8x4xbf16>, vector<4x384xbf16>, vector<8x384xf32> -> vector<8x384xf32>
    %48 = arith.addf %42, %47 : vector<8x384xf32>
    %c0_47 = arith.constant 0 : index
    %c0_48 = arith.constant 0 : index
    %c19 = arith.constant 19 : index
    %49 = vector.load %arg8[%c0_47, %c0_48, %c19] : memref<1x4x512xbf16, #tpu.memory_space<vmem>>, vector<1x4x384xbf16>
    %50 = vector.shape_cast %49 : vector<1x4x384xbf16> to vector<4x384xbf16>
    %c4 = arith.constant 4 : index
    %c0_49 = arith.constant 0 : index
    %c0_50 = arith.constant 0 : index
    %51 = vector.load %arg4[%c4, %c0_49, %c0_50] : memref<9x8x4xbf16, #tpu.memory_space<vmem>>, vector<1x8x4xbf16>
    %52 = vector.shape_cast %51 : vector<1x8x4xbf16> to vector<8x4xbf16>
    %cst_51 = arith.constant dense<0.000000e+00> : vector<8x384xf32>
    %53 = tpu.matmul %52, %50, %cst_51 {dimension_numbers = #tpu.dot_dimension_numbers<[1], [0], [0], [1], [0, 0, 1, 1], [], []>} : vector<8x4xbf16>, vector<4x384xbf16>, vector<8x384xf32> -> vector<8x384xf32>
    %54 = arith.addf %48, %53 : vector<8x384xf32>
    %c0_52 = arith.constant 0 : index
    %c0_53 = arith.constant 0 : index
    %c20 = arith.constant 20 : index
    %55 = vector.load %arg8[%c0_52, %c0_53, %c20] : memref<1x4x512xbf16, #tpu.memory_space<vmem>>, vector<1x4x384xbf16>
    %56 = vector.shape_cast %55 : vector<1x4x384xbf16> to vector<4x384xbf16>
    %c5 = arith.constant 5 : index
    %c0_54 = arith.constant 0 : index
    %c0_55 = arith.constant 0 : index
    %57 = vector.load %arg4[%c5, %c0_54, %c0_55] : memref<9x8x4xbf16, #tpu.memory_space<vmem>>, vector<1x8x4xbf16>
    %58 = vector.shape_cast %57 : vector<1x8x4xbf16> to vector<8x4xbf16>
    %cst_56 = arith.constant dense<0.000000e+00> : vector<8x384xf32>
    %59 = tpu.matmul %58, %56, %cst_56 {dimension_numbers = #tpu.dot_dimension_numbers<[1], [0], [0], [1], [0, 0, 1, 1], [], []>} : vector<8x4xbf16>, vector<4x384xbf16>, vector<8x384xf32> -> vector<8x384xf32>
    %60 = arith.addf %54, %59 : vector<8x384xf32>
    %c0_57 = arith.constant 0 : index
    %c0_58 = arith.constant 0 : index
    %c36 = arith.constant 36 : index
    %61 = vector.load %arg8[%c0_57, %c0_58, %c36] : memref<1x4x512xbf16, #tpu.memory_space<vmem>>, vector<1x4x384xbf16>
    %62 = vector.shape_cast %61 : vector<1x4x384xbf16> to vector<4x384xbf16>
    %c6 = arith.constant 6 : index
    %c0_59 = arith.constant 0 : index
    %c0_60 = arith.constant 0 : index
    %63 = vector.load %arg4[%c6, %c0_59, %c0_60] : memref<9x8x4xbf16, #tpu.memory_space<vmem>>, vector<1x8x4xbf16>
    %64 = vector.shape_cast %63 : vector<1x8x4xbf16> to vector<8x4xbf16>
    %cst_61 = arith.constant dense<0.000000e+00> : vector<8x384xf32>
    %65 = tpu.matmul %64, %62, %cst_61 {dimension_numbers = #tpu.dot_dimension_numbers<[1], [0], [0], [1], [0, 0, 1, 1], [], []>} : vector<8x4xbf16>, vector<4x384xbf16>, vector<8x384xf32> -> vector<8x384xf32>
    %66 = arith.addf %60, %65 : vector<8x384xf32>
    %c0_62 = arith.constant 0 : index
    %c0_63 = arith.constant 0 : index
    %c37 = arith.constant 37 : index
    %67 = vector.load %arg8[%c0_62, %c0_63, %c37] : memref<1x4x512xbf16, #tpu.memory_space<vmem>>, vector<1x4x384xbf16>
    %68 = vector.shape_cast %67 : vector<1x4x384xbf16> to vector<4x384xbf16>
    %c7 = arith.constant 7 : index
    %c0_64 = arith.constant 0 : index
    %c0_65 = arith.constant 0 : index
    %69 = vector.load %arg4[%c7, %c0_64, %c0_65] : memref<9x8x4xbf16, #tpu.memory_space<vmem>>, vector<1x8x4xbf16>
    %70 = vector.shape_cast %69 : vector<1x8x4xbf16> to vector<8x4xbf16>
    %cst_66 = arith.constant dense<0.000000e+00> : vector<8x384xf32>
    %71 = tpu.matmul %70, %68, %cst_66 {dimension_numbers = #tpu.dot_dimension_numbers<[1], [0], [0], [1], [0, 0, 1, 1], [], []>} : vector<8x4xbf16>, vector<4x384xbf16>, vector<8x384xf32> -> vector<8x384xf32>
    %72 = arith.addf %66, %71 : vector<8x384xf32>
    %c0_67 = arith.constant 0 : index
    %c0_68 = arith.constant 0 : index
    %c38 = arith.constant 38 : index
    %73 = vector.load %arg8[%c0_67, %c0_68, %c38] : memref<1x4x512xbf16, #tpu.memory_space<vmem>>, vector<1x4x384xbf16>
    %74 = vector.shape_cast %73 : vector<1x4x384xbf16> to vector<4x384xbf16>
    %c8 = arith.constant 8 : index
    %c0_69 = arith.constant 0 : index
    %c0_70 = arith.constant 0 : index
    %75 = vector.load %arg4[%c8, %c0_69, %c0_70] : memref<9x8x4xbf16, #tpu.memory_space<vmem>>, vector<1x8x4xbf16>
    %76 = vector.shape_cast %75 : vector<1x8x4xbf16> to vector<8x4xbf16>
    %cst_71 = arith.constant dense<0.000000e+00> : vector<8x384xf32>
    %77 = tpu.matmul %76, %74, %cst_71 {dimension_numbers = #tpu.dot_dimension_numbers<[1], [0], [0], [1], [0, 0, 1, 1], [], []>} : vector<8x4xbf16>, vector<4x384xbf16>, vector<8x384xf32> -> vector<8x384xf32>
    %78 = arith.addf %72, %77 : vector<8x384xf32>
    %79 = vector.broadcast %20 : vector<8x1xf32> to vector<8x384xf32>
    %80 = arith.mulf %78, %79 : vector<8x384xf32>
    %81 = vector.broadcast %23 : vector<8x1xf32> to vector<8x384xf32>
    %82 = arith.addf %80, %81 : vector<8x384xf32>
    %cst_72 = arith.constant 0.000000e+00 : f32
    %83 = vector.broadcast %cst_72 : f32 to vector<8x384xf32>
    %84 = arith.cmpf oge, %82, %83 : vector<8x384xf32>
    %cst_73 = arith.constant 0.00999999977 : f32
    %85 = vector.broadcast %cst_73 : f32 to vector<8x384xf32>
    %86 = arith.mulf %85, %82 : vector<8x384xf32>
    %87 = arith.select %84, %82, %86 : vector<8x384xi1>, vector<8x384xf32>
    %c0_74 = arith.constant 0 : index
    %c0_75 = arith.constant 0 : index
    %c0_76 = arith.constant 0 : index
    %88 = vector.load %arg7[%c0_74, %c0_75, %c0_76] : memref<1x8x384xf32, #tpu.memory_space<vmem>>, vector<1x8x384xf32>
    %89 = vector.shape_cast %88 : vector<1x8x384xf32> to vector<8x384xf32>
    %90 = vector.shape_cast %87 : vector<8x384xf32> to vector<1x8x384xf32>
    tpu.vector_store %arg7[%c0_74, %c0_75, %c0_76], %90 {strides = array<i32>} : memref<1x8x384xf32, #tpu.memory_space<vmem>>, vector<1x8x384xf32>,
    return
  }
  func.func @transform_0(%arg0: i32, %arg1: i32) -> (i32, i32, i32, i32) {
    %c0_i32 = arith.constant 0 : i32
    %c0_i32_0 = arith.constant 0 : i32
    %c0_i32_1 = arith.constant 0 : i32
    return %arg0, %c0_i32, %c0_i32_0, %arg1 : i32, i32, i32, i32
  }
  func.func @transform_1(%arg0: i32, %arg1: i32) -> (i32, i32, i32, i32) {
    %c0_i32 = arith.constant 0 : i32
    %c0_i32_0 = arith.constant 0 : i32
    %c0_i32_1 = arith.constant 0 : i32
    return %arg0, %c0_i32, %c0_i32_0, %arg1 : i32, i32, i32, i32
  }
  func.func @transform_2(%arg0: i32, %arg1: i32) -> (i32, i32, i32) {
    %c0_i32 = arith.constant 0 : i32
    %c0_i32_0 = arith.constant 0 : i32
    %c0_i32_1 = arith.constant 0 : i32
    %c0_i32_2 = arith.constant 0 : i32
    return %c0_i32, %c0_i32_0, %c0_i32_1 : i32, i32, i32
  }
  func.func @transform_3(%arg0: i32, %arg1: i32) -> (i32, i32, i32, i32) {
    %c0_i32 = arith.constant 0 : i32
    %c0_i32_0 = arith.constant 0 : i32
    %c0_i32_1 = arith.constant 0 : i32
    %c0_i32_2 = arith.constant 0 : i32
    %c0_i32_3 = arith.constant 0 : i32
    return %c0_i32, %c0_i32_0, %c0_i32_1, %c0_i32_2 : i32, i32, i32, i32
  }
  func.func @transform_4(%arg0: i32, %arg1: i32) -> (i32, i32) {
    %c0_i32 = arith.constant 0 : i32
    %c0_i32_0 = arith.constant 0 : i32
    %c0_i32_1 = arith.constant 0 : i32
    return %c0_i32, %c0_i32_0 : i32, i32
  }
  func.func @transform_5(%arg0: i32, %arg1: i32) -> (i32, i32, i32) {
    %c0_i32 = arith.constant 0 : i32
    %c0_i32_0 = arith.constant 0 : i32
    return %arg0, %c0_i32, %arg1 : i32, i32, i32
  }
}

module attributes {stable_mosaic.version = 11 : i64} {
  func.func @_conv_stats_kernel(%arg0: i32, %arg1: i32, %arg2: memref<1x1x4x384xbf16, #tpu.memory_space<vmem>>, %arg3: memref<1x1x4x128xbf16, #tpu.memory_space<vmem>>, %arg4: memref<9x8x4xbf16, #tpu.memory_space<vmem>>, %arg5: memref<1x384xf32, #tpu.memory_space<vmem>>, %arg6: memref<1x1x8x2xf32, #tpu.memory_space<vmem>>, %arg7: memref<1x4x512xbf16, #tpu.memory_space<vmem>>) attributes {dimension_semantics = [#tpu.dimension_semantics<parallel>, #tpu.dimension_semantics<parallel>], iteration_bounds = array<i64: 2, 1>, scalar_prefetch = 0 : i64, scratch_operands = 1 : i64, tpu.core_type = #tpu.core_type<tc>, window_params = [{transform_indices = @transform_0, window_bounds = array<i64: 1, 1, 4, 384>}, {transform_indices = @transform_1, window_bounds = array<i64: 1, 1, 4, 128>}, {pipeline_mode = #tpu.pipeline_mode<synchronous>, transform_indices = @transform_2, window_bounds = array<i64: 9, 8, 4>}, {transform_indices = @transform_3, window_bounds = array<i64: 1, 384>}, {transform_indices = @transform_4, window_bounds = array<i64: 1, 1, 8, 2>}]} {
    %c0 = arith.constant 0 : index
    %c0_0 = arith.constant 0 : index
    %c0_1 = arith.constant 0 : index
    %c0_2 = arith.constant 0 : index
    %0 = vector.load %arg2[%c0, %c0_0, %c0_1, %c0_2] : memref<1x1x4x384xbf16, #tpu.memory_space<vmem>>, vector<1x1x4x384xbf16>
    %1 = vector.shape_cast %0 : vector<1x1x4x384xbf16> to vector<1x4x384xbf16>
    %c0_3 = arith.constant 0 : index
    %c0_4 = arith.constant 0 : index
    %c0_5 = arith.constant 0 : index
    %2 = vector.load %arg7[%c0_3, %c0_4, %c0_5] : memref<1x4x512xbf16, #tpu.memory_space<vmem>>, vector<1x4x384xbf16>
    tpu.vector_store %arg7[%c0_3, %c0_4, %c0_5], %1 {strides = array<i32>} : memref<1x4x512xbf16, #tpu.memory_space<vmem>>, vector<1x4x384xbf16>,
    %c0_6 = arith.constant 0 : index
    %c0_7 = arith.constant 0 : index
    %c0_8 = arith.constant 0 : index
    %c0_9 = arith.constant 0 : index
    %3 = vector.load %arg3[%c0_6, %c0_7, %c0_8, %c0_9] : memref<1x1x4x128xbf16, #tpu.memory_space<vmem>>, vector<1x1x4x128xbf16>
    %4 = vector.shape_cast %3 : vector<1x1x4x128xbf16> to vector<1x4x128xbf16>
    %c0_10 = arith.constant 0 : index
    %c0_11 = arith.constant 0 : index
    %c384 = arith.constant 384 : index
    %5 = vector.load %arg7[%c0_10, %c0_11, %c384] : memref<1x4x512xbf16, #tpu.memory_space<vmem>>, vector<1x4x128xbf16>
    tpu.vector_store %arg7[%c0_10, %c0_11, %c384], %4 {strides = array<i32>} : memref<1x4x512xbf16, #tpu.memory_space<vmem>>, vector<1x4x128xbf16>,
    %cst = arith.constant 0.000000e+00 : f32
    %6 = vector.broadcast %cst : f32 to vector<8x1xf32>
    %cst_12 = arith.constant 0.000000e+00 : f32
    %7 = vector.broadcast %cst_12 : f32 to vector<8x1xf32>
    %cst_13 = arith.constant 0.000000e+00 : f32
    %8 = vector.broadcast %cst_13 : f32 to vector<8x384xf32>
    %c0_14 = arith.constant 0 : index
    %c0_15 = arith.constant 0 : index
    %c0_16 = arith.constant 0 : index
    %9 = vector.load %arg7[%c0_14, %c0_15, %c0_16] : memref<1x4x512xbf16, #tpu.memory_space<vmem>>, vector<1x4x384xbf16>
    %10 = vector.shape_cast %9 : vector<1x4x384xbf16> to vector<4x384xbf16>
    %c0_17 = arith.constant 0 : index
    %c0_18 = arith.constant 0 : index
    %c0_19 = arith.constant 0 : index
    %11 = vector.load %arg4[%c0_17, %c0_18, %c0_19] : memref<9x8x4xbf16, #tpu.memory_space<vmem>>, vector<1x8x4xbf16>
    %12 = vector.shape_cast %11 : vector<1x8x4xbf16> to vector<8x4xbf16>
    %cst_20 = arith.constant dense<0.000000e+00> : vector<8x384xf32>
    %13 = tpu.matmul %12, %10, %cst_20 {dimension_numbers = #tpu.dot_dimension_numbers<[1], [0], [0], [1], [0, 0, 1, 1], [], []>} : vector<8x4xbf16>, vector<4x384xbf16>, vector<8x384xf32> -> vector<8x384xf32>
    %14 = arith.addf %8, %13 : vector<8x384xf32>
    %c0_21 = arith.constant 0 : index
    %c0_22 = arith.constant 0 : index
    %c1 = arith.constant 1 : index
    %15 = vector.load %arg7[%c0_21, %c0_22, %c1] : memref<1x4x512xbf16, #tpu.memory_space<vmem>>, vector<1x4x384xbf16>
    %16 = vector.shape_cast %15 : vector<1x4x384xbf16> to vector<4x384xbf16>
    %c1_23 = arith.constant 1 : index
    %c0_24 = arith.constant 0 : index
    %c0_25 = arith.constant 0 : index
    %17 = vector.load %arg4[%c1_23, %c0_24, %c0_25] : memref<9x8x4xbf16, #tpu.memory_space<vmem>>, vector<1x8x4xbf16>
    %18 = vector.shape_cast %17 : vector<1x8x4xbf16> to vector<8x4xbf16>
    %cst_26 = arith.constant dense<0.000000e+00> : vector<8x384xf32>
    %19 = tpu.matmul %18, %16, %cst_26 {dimension_numbers = #tpu.dot_dimension_numbers<[1], [0], [0], [1], [0, 0, 1, 1], [], []>} : vector<8x4xbf16>, vector<4x384xbf16>, vector<8x384xf32> -> vector<8x384xf32>
    %20 = arith.addf %14, %19 : vector<8x384xf32>
    %c0_27 = arith.constant 0 : index
    %c0_28 = arith.constant 0 : index
    %c2 = arith.constant 2 : index
    %21 = vector.load %arg7[%c0_27, %c0_28, %c2] : memref<1x4x512xbf16, #tpu.memory_space<vmem>>, vector<1x4x384xbf16>
    %22 = vector.shape_cast %21 : vector<1x4x384xbf16> to vector<4x384xbf16>
    %c2_29 = arith.constant 2 : index
    %c0_30 = arith.constant 0 : index
    %c0_31 = arith.constant 0 : index
    %23 = vector.load %arg4[%c2_29, %c0_30, %c0_31] : memref<9x8x4xbf16, #tpu.memory_space<vmem>>, vector<1x8x4xbf16>
    %24 = vector.shape_cast %23 : vector<1x8x4xbf16> to vector<8x4xbf16>
    %cst_32 = arith.constant dense<0.000000e+00> : vector<8x384xf32>
    %25 = tpu.matmul %24, %22, %cst_32 {dimension_numbers = #tpu.dot_dimension_numbers<[1], [0], [0], [1], [0, 0, 1, 1], [], []>} : vector<8x4xbf16>, vector<4x384xbf16>, vector<8x384xf32> -> vector<8x384xf32>
    %26 = arith.addf %20, %25 : vector<8x384xf32>
    %c0_33 = arith.constant 0 : index
    %c0_34 = arith.constant 0 : index
    %c18 = arith.constant 18 : index
    %27 = vector.load %arg7[%c0_33, %c0_34, %c18] : memref<1x4x512xbf16, #tpu.memory_space<vmem>>, vector<1x4x384xbf16>
    %28 = vector.shape_cast %27 : vector<1x4x384xbf16> to vector<4x384xbf16>
    %c3 = arith.constant 3 : index
    %c0_35 = arith.constant 0 : index
    %c0_36 = arith.constant 0 : index
    %29 = vector.load %arg4[%c3, %c0_35, %c0_36] : memref<9x8x4xbf16, #tpu.memory_space<vmem>>, vector<1x8x4xbf16>
    %30 = vector.shape_cast %29 : vector<1x8x4xbf16> to vector<8x4xbf16>
    %cst_37 = arith.constant dense<0.000000e+00> : vector<8x384xf32>
    %31 = tpu.matmul %30, %28, %cst_37 {dimension_numbers = #tpu.dot_dimension_numbers<[1], [0], [0], [1], [0, 0, 1, 1], [], []>} : vector<8x4xbf16>, vector<4x384xbf16>, vector<8x384xf32> -> vector<8x384xf32>
    %32 = arith.addf %26, %31 : vector<8x384xf32>
    %c0_38 = arith.constant 0 : index
    %c0_39 = arith.constant 0 : index
    %c19 = arith.constant 19 : index
    %33 = vector.load %arg7[%c0_38, %c0_39, %c19] : memref<1x4x512xbf16, #tpu.memory_space<vmem>>, vector<1x4x384xbf16>
    %34 = vector.shape_cast %33 : vector<1x4x384xbf16> to vector<4x384xbf16>
    %c4 = arith.constant 4 : index
    %c0_40 = arith.constant 0 : index
    %c0_41 = arith.constant 0 : index
    %35 = vector.load %arg4[%c4, %c0_40, %c0_41] : memref<9x8x4xbf16, #tpu.memory_space<vmem>>, vector<1x8x4xbf16>
    %36 = vector.shape_cast %35 : vector<1x8x4xbf16> to vector<8x4xbf16>
    %cst_42 = arith.constant dense<0.000000e+00> : vector<8x384xf32>
    %37 = tpu.matmul %36, %34, %cst_42 {dimension_numbers = #tpu.dot_dimension_numbers<[1], [0], [0], [1], [0, 0, 1, 1], [], []>} : vector<8x4xbf16>, vector<4x384xbf16>, vector<8x384xf32> -> vector<8x384xf32>
    %38 = arith.addf %32, %37 : vector<8x384xf32>
    %c0_43 = arith.constant 0 : index
    %c0_44 = arith.constant 0 : index
    %c20 = arith.constant 20 : index
    %39 = vector.load %arg7[%c0_43, %c0_44, %c20] : memref<1x4x512xbf16, #tpu.memory_space<vmem>>, vector<1x4x384xbf16>
    %40 = vector.shape_cast %39 : vector<1x4x384xbf16> to vector<4x384xbf16>
    %c5 = arith.constant 5 : index
    %c0_45 = arith.constant 0 : index
    %c0_46 = arith.constant 0 : index
    %41 = vector.load %arg4[%c5, %c0_45, %c0_46] : memref<9x8x4xbf16, #tpu.memory_space<vmem>>, vector<1x8x4xbf16>
    %42 = vector.shape_cast %41 : vector<1x8x4xbf16> to vector<8x4xbf16>
    %cst_47 = arith.constant dense<0.000000e+00> : vector<8x384xf32>
    %43 = tpu.matmul %42, %40, %cst_47 {dimension_numbers = #tpu.dot_dimension_numbers<[1], [0], [0], [1], [0, 0, 1, 1], [], []>} : vector<8x4xbf16>, vector<4x384xbf16>, vector<8x384xf32> -> vector<8x384xf32>
    %44 = arith.addf %38, %43 : vector<8x384xf32>
    %c0_48 = arith.constant 0 : index
    %c0_49 = arith.constant 0 : index
    %c36 = arith.constant 36 : index
    %45 = vector.load %arg7[%c0_48, %c0_49, %c36] : memref<1x4x512xbf16, #tpu.memory_space<vmem>>, vector<1x4x384xbf16>
    %46 = vector.shape_cast %45 : vector<1x4x384xbf16> to vector<4x384xbf16>
    %c6 = arith.constant 6 : index
    %c0_50 = arith.constant 0 : index
    %c0_51 = arith.constant 0 : index
    %47 = vector.load %arg4[%c6, %c0_50, %c0_51] : memref<9x8x4xbf16, #tpu.memory_space<vmem>>, vector<1x8x4xbf16>
    %48 = vector.shape_cast %47 : vector<1x8x4xbf16> to vector<8x4xbf16>
    %cst_52 = arith.constant dense<0.000000e+00> : vector<8x384xf32>
    %49 = tpu.matmul %48, %46, %cst_52 {dimension_numbers = #tpu.dot_dimension_numbers<[1], [0], [0], [1], [0, 0, 1, 1], [], []>} : vector<8x4xbf16>, vector<4x384xbf16>, vector<8x384xf32> -> vector<8x384xf32>
    %50 = arith.addf %44, %49 : vector<8x384xf32>
    %c0_53 = arith.constant 0 : index
    %c0_54 = arith.constant 0 : index
    %c37 = arith.constant 37 : index
    %51 = vector.load %arg7[%c0_53, %c0_54, %c37] : memref<1x4x512xbf16, #tpu.memory_space<vmem>>, vector<1x4x384xbf16>
    %52 = vector.shape_cast %51 : vector<1x4x384xbf16> to vector<4x384xbf16>
    %c7 = arith.constant 7 : index
    %c0_55 = arith.constant 0 : index
    %c0_56 = arith.constant 0 : index
    %53 = vector.load %arg4[%c7, %c0_55, %c0_56] : memref<9x8x4xbf16, #tpu.memory_space<vmem>>, vector<1x8x4xbf16>
    %54 = vector.shape_cast %53 : vector<1x8x4xbf16> to vector<8x4xbf16>
    %cst_57 = arith.constant dense<0.000000e+00> : vector<8x384xf32>
    %55 = tpu.matmul %54, %52, %cst_57 {dimension_numbers = #tpu.dot_dimension_numbers<[1], [0], [0], [1], [0, 0, 1, 1], [], []>} : vector<8x4xbf16>, vector<4x384xbf16>, vector<8x384xf32> -> vector<8x384xf32>
    %56 = arith.addf %50, %55 : vector<8x384xf32>
    %c0_58 = arith.constant 0 : index
    %c0_59 = arith.constant 0 : index
    %c38 = arith.constant 38 : index
    %57 = vector.load %arg7[%c0_58, %c0_59, %c38] : memref<1x4x512xbf16, #tpu.memory_space<vmem>>, vector<1x4x384xbf16>
    %58 = vector.shape_cast %57 : vector<1x4x384xbf16> to vector<4x384xbf16>
    %c8 = arith.constant 8 : index
    %c0_60 = arith.constant 0 : index
    %c0_61 = arith.constant 0 : index
    %59 = vector.load %arg4[%c8, %c0_60, %c0_61] : memref<9x8x4xbf16, #tpu.memory_space<vmem>>, vector<1x8x4xbf16>
    %60 = vector.shape_cast %59 : vector<1x8x4xbf16> to vector<8x4xbf16>
    %cst_62 = arith.constant dense<0.000000e+00> : vector<8x384xf32>
    %61 = tpu.matmul %60, %58, %cst_62 {dimension_numbers = #tpu.dot_dimension_numbers<[1], [0], [0], [1], [0, 0, 1, 1], [], []>} : vector<8x4xbf16>, vector<4x384xbf16>, vector<8x384xf32> -> vector<8x384xf32>
    %62 = arith.addf %56, %61 : vector<8x384xf32>
    %c0_63 = arith.constant 0 : index
    %c0_64 = arith.constant 0 : index
    %63 = vector.load %arg5[%c0_63, %c0_64] : memref<1x384xf32, #tpu.memory_space<vmem>>, vector<1x384xf32>
    %64 = vector.broadcast %63 : vector<1x384xf32> to vector<8x384xf32>
    %65 = arith.mulf %62, %64 : vector<8x384xf32>
    %cst_65 = arith.constant dense<0.000000e+00> : vector<8xf32>
    %66 = vector.multi_reduction <add>, %65, %cst_65 [1] : vector<8x384xf32> to vector<8xf32>
    %67 = vector.shape_cast %66 : vector<8xf32> to vector<8x1xf32>
    %68 = arith.addf %6, %67 : vector<8x1xf32>
    %69 = arith.mulf %65, %62 : vector<8x384xf32>
    %cst_66 = arith.constant dense<0.000000e+00> : vector<8xf32>
    %70 = vector.multi_reduction <add>, %69, %cst_66 [1] : vector<8x384xf32> to vector<8xf32>
    %71 = vector.shape_cast %70 : vector<8xf32> to vector<8x1xf32>
    %72 = arith.addf %7, %71 : vector<8x1xf32>
    %c0_67 = arith.constant 0 : index
    %c0_68 = arith.constant 0 : index
    %c0_69 = arith.constant 0 : index
    %c0_70 = arith.constant 0 : index
    %73 = vector.load %arg6[%c0_67, %c0_68, %c0_69, %c0_70] : memref<1x1x8x2xf32, #tpu.memory_space<vmem>>, vector<1x1x8x1xf32>
    %74 = vector.shape_cast %73 : vector<1x1x8x1xf32> to vector<8x1xf32>
    %75 = vector.shape_cast %68 : vector<8x1xf32> to vector<1x1x8x1xf32>
    tpu.vector_store %arg6[%c0_67, %c0_68, %c0_69, %c0_70], %75 {strides = array<i32>} : memref<1x1x8x2xf32, #tpu.memory_space<vmem>>, vector<1x1x8x1xf32>,
    %c0_71 = arith.constant 0 : index
    %c0_72 = arith.constant 0 : index
    %c0_73 = arith.constant 0 : index
    %c1_74 = arith.constant 1 : index
    %76 = vector.load %arg6[%c0_71, %c0_72, %c0_73, %c1_74] : memref<1x1x8x2xf32, #tpu.memory_space<vmem>>, vector<1x1x8x1xf32>
    %77 = vector.shape_cast %76 : vector<1x1x8x1xf32> to vector<8x1xf32>
    %78 = vector.shape_cast %72 : vector<8x1xf32> to vector<1x1x8x1xf32>
    tpu.vector_store %arg6[%c0_71, %c0_72, %c0_73, %c1_74], %78 {strides = array<i32>} : memref<1x1x8x2xf32, #tpu.memory_space<vmem>>, vector<1x1x8x1xf32>,
    return
  }
  func.func @transform_0(%arg0: i32, %arg1: i32) -> (i32, i32, i32, i32) {
    %c0_i32 = arith.constant 0 : i32
    %c0_i32_0 = arith.constant 0 : i32
    %c0_i32_1 = arith.constant 0 : i32
    return %arg0, %c0_i32, %c0_i32_0, %arg1 : i32, i32, i32, i32
  }
  func.func @transform_1(%arg0: i32, %arg1: i32) -> (i32, i32, i32, i32) {
    %c0_i32 = arith.constant 0 : i32
    %c0_i32_0 = arith.constant 0 : i32
    %c0_i32_1 = arith.constant 0 : i32
    return %arg0, %c0_i32, %c0_i32_0, %arg1 : i32, i32, i32, i32
  }
  func.func @transform_2(%arg0: i32, %arg1: i32) -> (i32, i32, i32) {
    %c0_i32 = arith.constant 0 : i32
    %c0_i32_0 = arith.constant 0 : i32
    %c0_i32_1 = arith.constant 0 : i32
    %c0_i32_2 = arith.constant 0 : i32
    return %c0_i32, %c0_i32_0, %c0_i32_1 : i32, i32, i32
  }
  func.func @transform_3(%arg0: i32, %arg1: i32) -> (i32, i32) {
    %c0_i32 = arith.constant 0 : i32
    %c0_i32_0 = arith.constant 0 : i32
    return %c0_i32, %arg1 : i32, i32
  }
  func.func @transform_4(%arg0: i32, %arg1: i32) -> (i32, i32, i32, i32) {
    %c0_i32 = arith.constant 0 : i32
    %c0_i32_0 = arith.constant 0 : i32
    %c0_i32_1 = arith.constant 0 : i32
    return %arg0, %arg1, %c0_i32, %c0_i32_0 : i32, i32, i32, i32
  }
}

</mosaic_0001>

<bundles_post_ra>
// kernel: leaky_relu_bnns_conv2d.3
= control target key start
LH: loop header
LB: loop body
LE: loop exit
PB: predicated region body
PF: predicated region fallthrough
CT: control target
= control target key end

     0   :  { %s1888_s18 = smov 0   ;;  %s1890_s19 = smov 0   ;;  %s2083_s0 = inlined_call_operand.vmem [shape: bf16[2,1,4,384], index: 0, kind: input, shape index: {}]   ;;  %s2084_s1 = inlined_call_operand.vmem [shape: bf16[2,1,4,128], index: 1, kind: input, shape index: {}]   ;;  %s2085_s2 = inlined_call_operand.vmem [shape: bf16[9,8,4], index: 2, kind: input, shape index: {}]   ;;  %s2086_s3 = inlined_call_operand.vmem [shape: f32[2,1,8,2], index: 3, kind: input, shape index: {}]   ;;  %s2087_s4 = inlined_call_operand.vmem [shape: f32[8,1], index: 4, kind: input, shape index: {}]   ;;  %s2088_s5 = inlined_call_operand.vmem [shape: f32[2,8,384], index: 5, kind: output, shape index: {}]  }
   0x1   :  { %s1892_s20 = smov 0  }
   0x2 LB: > { %s27_s21 = sadd.s32 1, %s1838_s19  ;;  %p1596_p0 = scmp.ge.s32.totalorder %s1842_s20, 1  ;;  %s1842_s20 = sphi %s1892_s20, %s15_s20   ;;  %s1838_s19 = sphi %s1890_s19, %s2090_s19   ;;  %s1834_s18 = sphi %s1888_s18, %s2089_s18  }
   0x3   : > { %p29_p1 = scmp.ge.s32.totalorder %s27_s21, 2  ;;  %p222_p2 = scmp.lt.s32.totalorder %s1842_s20, 3 }
   0x5   : > { %s2092_s21 = smov (%p29_p1, %s27_s21), 0  ;;  %p223_p3 = pnand %p1596_p0, %p222_p2 }
   0x6   : > { %p266_p4 = scmp.lt.s32.totalorder (!%p223_p3), %s1834_s18, 1  ;;  %v1844_v0 = vmov (!%p223_p3), 1983009808   ;;  %v330_v2 = vlaneseq (!%p223_p3)  ;;  %v1845_v8 = vmov (!%p223_p3), 0.0   ;;  %v1846_v9 = vmov (!%p223_p3), 0   ;;  %s1848_s30 = smov (!%p223_p3), 127  }
   0x7   : > { %226 = sbr.rel (%p223_p3) target bundleno = 479 (0x1df), region = 40  ;;  %v328_v1 = vunpack.c.l.s4 (!%p223_p3), %v1844_v0  ;;  %1655 = vmatprep.subr.bf16.mxu1 (!%p223_p3), %v1845_v8  ;;  %401 = vmatprep.mubr.bf16.mxu0 (!%p223_p3), %v1846_v9  ;;  %vm1847_vm0 = vmmov (!%p223_p3), 0   ;;  %s1849_s6 = smov (!%p223_p3), 126   ;;  %v297_v16 = vld [vmem:[%s2086_s3] sm:$0xff] (!%p223_p3)  ;;  %v298_v17 = vld [vmem:[%s2086_s3 + $0x8] sm:$0xff] (!%p223_p3)  ;;  %vm299_vm1 = vcmask (!%p223_p3), 15360  }
   0x8   : > { %v331_v6 = vshrl.u32 (!%p223_p3), %v330_v2, 7  ;;  %1814 = vset.pattern.permute.xlu1 (!%p223_p3), %v1846_v9  ;;  %1657 = vmatprep.mubr.msk.bf16.mxu1 (!%p223_p3), %vm1847_vm0, %v1845_v8  ;;  %s1850_s7 = smov (!%p223_p3), 110   ;;  %s1851_s8 = smov (!%p223_p3), 109   ;;  %v300_v18 = vsel (!%p223_p3), %vm299_vm1, %v297_v16, 0.0  ;;  %v301_v19 = vsel (!%p223_p3), %vm299_vm1, %v298_v17, 0.0  ;;  %v1856_v23 = vmov (!%p223_p3), 1  }
   0x9   : > { %v329_v5 = vunpack.c.0.s8 (!%p223_p3), %v328_v1  ;;  %s1852_s9 = smov (!%p223_p3), 108   ;;  %s1853_s10 = smov (!%p223_p3), 92   ;;  %v302_v20 = vadd.f32 (!%p223_p3), %v301_v19, %v300_v18  ;;  %1813 = vset.pattern.permute.xlu0 (!%p223_p3), %v1856_v23  ;;  %vm351_vm2 = vcmask (!%p223_p3), 1039360   ;;  %vm359_vm3 = vcmask (!%p223_p3), 1041408   ;;  %v1600_v37 = vld [vmem:[%s2085_s2 + $0x4] sm:$0xf] (!%p223_p3) }
   0xa   : > { %s1854_s15 = smov (!%p223_p3), 91   ;;  %s1855_s16 = smov (!%p223_p3), 90   ;;  %vm355_vm4 = vcmask (!%p223_p3), 31744   ;;  %vm589_vm5 = vcmask (!%p223_p3), 1031168   ;;  %v321_v48 = vld [vmem:[%s2085_s2] sm:$0xf] (!%p223_p3) }
   0xb   : > { %v1916_v7 = vsub.s32 (!%p223_p3), %v329_v5, %v331_v6  ;;  %v1935_v21 = vmul.f32 (!%p223_p3), 0.001953125, %v302_v20  ;;  %s1857_s17 = smov (!%p223_p3), 1   ;;  %vm718_vm6 = vcmask (!%p223_p3), 900096   ;;  %v1607_v59 = vld [vmem:[%s2085_s2 + $0x8] sm:$0xf] (!%p223_p3)  ;;  %vm847_vm7 = vcmask (!%p223_p3), 891904  }
   0xc   : > { %v1611_v6 = vld [vmem:[%s2085_s2 + $0xc] sm:$0xf] (!%p223_p3)  ;;  %vm976_vm8 = vcmask (!%p223_p3), 883712   ;;  %v1615_v19 = vld [vmem:[%s2085_s2 + $0x10] sm:$0xf] (!%p223_p3)  ;;  %vm1105_vm9 = vcmask (!%p223_p3), 752640  }
   0xd   : > { %v304_v22 = vmul.f32 (!%p223_p3), %v1935_v21, %v1935_v21  ;;  %vm1234_vm10 = vcmask (!%p223_p3), 744448   ;;  %vm1363_vm11 = vcmask (!%p223_p3), 736256  }
   0xe   : > { %s2094_s18 = smov (!%p266_p4, %s1834_s18), 1 }
   0xf   : > { %s1773_s22 = smul.u32 6, %s2094_s18  ;;  %s1598_s23 = sshll.u32 %s2094_s18, 1 }
  0x10   : > { %s281_s26 = scalar_lea.vmem %s2084_s1, %s1598_s23 }
  0x11   : > { %s273_s29 = scalar_lea.vmem %s2083_s0, %s1773_s22  ;;  %v295_v3 = vld [vmem:[%s281_s26] sm:$0x3] }
  0x12   : > { %v293_v4 = vld [vmem:[%s273_s29] sm:$0x3f]  ;;  %296 = vst [vmem:[#allocation2 + $0x6] sm:$0x3] %v295_v3 }
  0x13   : > { %294 = vst [vmem:[#allocation2] sm:$0x3f] %v293_v4 }
  0x1a   : > { %v322_v10 = vld [vmem:[#allocation2] sm:$0xff] }
  0x1b   : > { %v333_v11 = vrot.slane %v322_v10, %v1916_v7  ;;  %v326_v12 = vcombine.high %v322_v10, %v322_v10  ;;  %v320_v24 = vld [vmem:[#allocation2] sm:$0x3f] }
  0x1c   : > { %v458_v26 = vrot.slane %v320_v24, %v1916_v7  ;;  %v451_v28 = vcombine.high %v320_v24, %v320_v24 }
  0x1d   : > { %343 = vrot.lane.b32.xlu0 %v333_v11, %s1848_s30  ;;  %v341_v13 = vcombine.high %v333_v11, %v333_v11  ;;  %v340_v14 = vrot.slane %v326_v12, %v1916_v7 }
  0x1e   : > { %v466_v30 = vcombine.high %v458_v26, %v458_v26  ;;  %v465_v35 = vrot.slane %v451_v28, %v1916_v7  ;;  %v471_v40 = vsel %vm359_vm3, %v458_v26, 0 }
  0x1f   : > { %347 = vrot.lane.b32.xlu1 %v340_v14, %s1848_s30  ;;  %v342_v15 = vcombine.high %v340_v14, %v340_v14 }
  0x20   : > { %v477_v42 = vsel %vm359_vm3, %v465_v35, 0 }
  0x21   : > { %345 = vrot.lane.b32.xlu0 %v341_v13, %s1848_s30 }
  0x23   : > { %349 = vrot.lane.b32.xlu1 %v342_v15, %s1848_s30 }
  0x25   : > { %581 = vrot.lane.b32.xlu0 %v333_v11, %s1849_s6 }
  0x27   : > { %583 = vrot.lane.b32.xlu1 %v341_v13, %s1849_s6 }
  0x29   : > { %585 = vrot.lane.b32.xlu0 %v340_v14, %s1849_s6 }
  0x2b   : > { %587 = vrot.lane.b32.xlu1 %v342_v15, %s1849_s6 }
  0x2d   : > { %710 = vrot.lane.b32.xlu0 %v333_v11, %s1850_s7 }
  0x2f   : > { %712 = vrot.lane.b32.xlu1 %v341_v13, %s1850_s7 }
  0x31   : > { %714 = vrot.lane.b32.xlu0 %v340_v14, %s1850_s7 }
  0x33   : > { %716 = vrot.lane.b32.xlu1 %v342_v15, %s1850_s7 }
  0x35   : > { %839 = vrot.lane.b32.xlu0 %v333_v11, %s1851_s8 }
  0x37   : > { %841 = vrot.lane.b32.xlu1 %v341_v13, %s1851_s8 }
  0x39   : > { %843 = vrot.lane.b32.xlu0 %v340_v14, %s1851_s8 }
  0x3b   : > { %845 = vrot.lane.b32.xlu1 %v342_v15, %s1851_s8 }
  0x3d   : > { %968 = vrot.lane.b32.xlu0 %v333_v11, %s1852_s9 }
  0x3f   : > { %970 = vrot.lane.b32.xlu1 %v341_v13, %s1852_s9 }
  0x41   : > { %972 = vrot.lane.b32.xlu0 %v340_v14, %s1852_s9 }
  0x43   : > { %974 = vrot.lane.b32.xlu1 %v342_v15, %s1852_s9 }
  0x45   : > { %1097 = vrot.lane.b32.xlu0 %v333_v11, %s1853_s10 }
  0x47   : > { %1099 = vrot.lane.b32.xlu1 %v341_v13, %s1853_s10 }
  0x49   : > { %1101 = vrot.lane.b32.xlu0 %v340_v14, %s1853_s10 }
  0x4b   : > { %1103 = vrot.lane.b32.xlu1 %v342_v15, %s1853_s10 }
  0x4d   : > { %1226 = vrot.lane.b32.xlu0 %v333_v11, %s1854_s15 }
  0x4f   : > { %1228 = vrot.lane.b32.xlu1 %v341_v13, %s1854_s15 }
  0x51   : > { %1230 = vrot.lane.b32.xlu0 %v340_v14, %s1854_s15 }
  0x53   : > { %1232 = vrot.lane.b32.xlu1 %v342_v15, %s1854_s15 }
  0x55   : > { %1355 = vrot.lane.b32.xlu0 %v333_v11, %s1855_s16 }
  0x57   : > { %1357 = vrot.lane.b32.xlu1 %v341_v13, %s1855_s16 }
  0x59   : > { %1359 = vrot.lane.b32.xlu0 %v340_v14, %s1855_s16 }
  0x5b   : > { %1361 = vrot.lane.b32.xlu1 %v342_v15, %s1855_s16 }
  0x5d   : > { %306 = vrot.lane.b32.xlu0 %v304_v22, %s1857_s17  ;;  %s1774_s17 = smul.u32 24, %s2094_s18 }
  0x5f   : > { %s290_s24 = scalar_lea.vmem %s2088_s5, %s1774_s17 }
  0x8f   : > { %v344_v25 = vpop.permute.xlu0 %343 }
  0x91   : > { %v348_v27 = vpop.permute.xlu1 %347 }
  0x93   : > { %v346_v29 = vpop.permute.xlu0 %345 }
  0x94   : > { %v353_v31 = vsel %vm351_vm2, %v346_v29, %v348_v27  ;;  %v352_v32 = vsel %vm351_vm2, %v344_v25, %v346_v29 }
  0x95   : > { %1601 = vmatprep.subr.msk.bf16.mxu0 %vm359_vm3, %v353_v31  ;;  %v350_v33 = vpop.permute.xlu1 %349  ;;  %v361_v34 = vsel %vm359_vm3, %v352_v32, 0 }
  0x96   : > { %370 = vmatpush1.bf16.msra.mxu0 %v361_v34  ;;  %v354_v36 = vsel %vm351_vm2, %v348_v27, %v350_v33  ;;  %v1619_v33 = vld [vmem:[%s2085_s2 + $0x14] sm:$0xf] }
  0x97   : > { %v582_v38 = vpop.permute.xlu0 %581  ;;  %v367_v39 = vsel %vm359_vm3, %v354_v36, 0  ;;  %1604 = vmatprep.subr.msk.bf16.mxu0 %vm359_vm3, %v466_v30 }
  0x98   : > { %1656 = vmatpush3.bf16.msra.mxu1 %v367_v39 }
  0x99   : > { %1602 = vmatmul.mubr.msk.bf16.vlgmr.msra.gmra.mrb[0].mxu0 %vm355_vm4, %v1600_v37  ;;  %v584_v41 = vpop.permute.xlu1 %583  ;;  %1661 = vmatprep.subr.bf16.mxu1 %v1845_v8 }
  0x9a   : > { %480 = vmatpush1.bf16.msra.mxu0 %v471_v40  ;;  %511 = vmatprep.mubr.bf16.mxu0 %v1846_v9  ;;  %v590_v47 = vsel %vm589_vm5, %v582_v38, %v584_v41 }
  0x9b   : > { %v586_v43 = vpop.permute.xlu0 %585  ;;  %1658 = vmatmul.mubr.msk.bf16.vlgmr.msra.gmra.mrb[0].mxu1 %vm355_vm4, %v1600_v37  ;;  %v597_v53 = vsel %vm359_vm3, %v590_v47, 0 }
  0x9c   : > { %v591_v44 = vsel %vm589_vm5, %v584_v41, %v586_v43  ;;  %1662 = vmatpush3.bf16.msra.mxu1 %v477_v42  ;;  %1663 = vmatprep.mubr.msk.bf16.mxu1 %vm1847_vm0, %v1845_v8  ;;  %v1623_v42 = vld [vmem:[%s2085_s2 + $0x18] sm:$0xf] }
  0x9d   : > { %v588_v45 = vpop.permute.xlu1 %587  ;;  %1608 = vmatprep.subr.msk.bf16.mxu0 %vm359_vm3, %v591_v44  ;;  %1667 = vmatprep.subr.bf16.mxu1 %v1845_v8 }
  0x9e   : > { %v592_v51 = vsel %vm589_vm5, %v586_v43, %v588_v45 }
  0x9f   : > { %v711_v46 = vpop.permute.xlu0 %710  ;;  %v603_v54 = vsel %vm359_vm3, %v592_v51, 0  ;;  %v1627_v51 = vld [vmem:[%s2085_s2 + $0x1c] sm:$0xf] }
  0xa1   : > { %v713_v49 = vpop.permute.xlu1 %712 }
  0xa2   : > { %v719_v58 = vsel %vm718_vm6, %v711_v46, %v713_v49 }
  0xa3   : > { %v715_v50 = vpop.permute.xlu0 %714  ;;  %v726_v62 = vsel %vm359_vm3, %v719_v58, 0 }
  0xa4   : > { %v720_v52 = vsel %vm718_vm6, %v713_v49, %v715_v50 }
  0xa5   : > { %1605 = vmatmul.mubr.msk.bf16.vlgmr.msra.gmra.mrb[0].mxu0 %vm355_vm4, %v321_v48  ;;  %v717_v56 = vpop.permute.xlu1 %716 }
  0xa6   : > { %606 = vmatpush1.bf16.msra.mxu0 %v597_v53  ;;  %637 = vmatprep.mubr.bf16.mxu0 %v1846_v9  ;;  %v721_v61 = vsel %vm718_vm6, %v715_v50, %v717_v56  ;;  %v313_v56 = vld [vmem:[%s2087_s4] sm:$0xff] }
  0xa7   : > { %1612 = vmatprep.subr.msk.bf16.mxu0 %vm359_vm3, %v720_v52  ;;  %v840_v55 = vpop.permute.xlu0 %839  ;;  %1664 = vmatmul.mubr.msk.bf16.vlgmr.msra.gmra.mrb[0].mxu1 %vm355_vm4, %v321_v48  ;;  %v732_v1 = vsel %vm359_vm3, %v721_v61, 0 }
  0xa8   : > { %1668 = vmatpush3.bf16.msra.mxu1 %v603_v54  ;;  %1669 = vmatprep.mubr.msk.bf16.mxu1 %vm1847_vm0, %v1845_v8 }
  0xa9   : > { %1673 = vmatprep.subr.bf16.mxu1 %v1845_v8  ;;  %v842_v63 = vpop.permute.xlu1 %841 }
  0xaa   : > { %v848_v5 = vsel %vm847_vm7, %v840_v55, %v842_v63  ;;  %v1631_v55 = vld [vmem:[%s2085_s2 + $0x20] sm:$0xf] }
  0xab   : > { %v844_v57 = vpop.permute.xlu0 %843  ;;  %v855_v11 = vsel %vm359_vm3, %v848_v5, 0 }
  0xac   : > { %v849_v0 = vsel %vm847_vm7, %v842_v63, %v844_v57 }
  0xad   : > { %v846_v3 = vpop.permute.xlu1 %845 }
  0xae   : > { %v850_v10 = vsel %vm847_vm7, %v844_v57, %v846_v3 }
  0xaf   : > { %v969_v60 = vpop.permute.xlu0 %968  ;;  %v861_v14 = vsel %vm359_vm3, %v850_v10, 0 }
  0xb1   : > { %1609 = vmatmul.mubr.msk.bf16.vlgmr.msra.gmra.mrb[0].mxu0 %vm355_vm4, %v1607_v59  ;;  %v971_v12 = vpop.permute.xlu1 %970 }
  0xb2   : > { %735 = vmatpush1.bf16.msra.mxu0 %v726_v62  ;;  %766 = vmatprep.mubr.bf16.mxu0 %v1846_v9  ;;  %v977_v18 = vsel %vm976_vm8, %v969_v60, %v971_v12 }
  0xb3   : > { %1616 = vmatprep.subr.msk.bf16.mxu0 %vm359_vm3, %v849_v0  ;;  %v973_v2 = vpop.permute.xlu0 %972  ;;  %1670 = vmatmul.mubr.msk.bf16.vlgmr.msra.gmra.mrb[0].mxu1 %vm355_vm4, %v1607_v59  ;;  %v984_v23 = vsel %vm359_vm3, %v977_v18, 0 }
  0xb4   : > { %1674 = vmatpush3.bf16.msra.mxu1 %v732_v1  ;;  %1675 = vmatprep.mubr.msk.bf16.mxu1 %vm1847_vm0, %v1845_v8  ;;  %v978_v13 = vsel %vm976_vm8, %v971_v12, %v973_v2 }
  0xb5   : > { %1679 = vmatprep.subr.bf16.mxu1 %v1845_v8  ;;  %v975_v16 = vpop.permute.xlu1 %974 }
  0xb6   : > { %v979_v22 = vsel %vm976_vm8, %v973_v2, %v975_v16 }
  0xb7   : > { %v1098_v4 = vpop.permute.xlu0 %1097  ;;  %v990_v26 = vsel %vm359_vm3, %v979_v22, 0 }
  0xb9   : > { %v1100_v24 = vpop.permute.xlu1 %1099 }
  0xba   : > { %v1106_v31 = vsel %vm1105_vm9, %v1098_v4, %v1100_v24 }
  0xbb   : > { %v1102_v7 = vpop.permute.xlu0 %1101  ;;  %v1113_v36 = vsel %vm359_vm3, %v1106_v31, 0 }
  0xbc   : > { %v1107_v25 = vsel %vm1105_vm9, %v1100_v24, %v1102_v7 }
  0xbd   : > { %1613 = vmatmul.mubr.msk.bf16.vlgmr.msra.gmra.mrb[0].mxu0 %vm355_vm4, %v1611_v6  ;;  %v1104_v28 = vpop.permute.xlu1 %1103 }
  0xbe   : > { %864 = vmatpush1.bf16.msra.mxu0 %v855_v11  ;;  %895 = vmatprep.mubr.bf16.mxu0 %v1846_v9  ;;  %v1108_v34 = vsel %vm1105_vm9, %v1102_v7, %v1104_v28 }
  0xbf   : > { %1620 = vmatprep.subr.msk.bf16.mxu0 %vm359_vm3, %v978_v13  ;;  %v1227_v15 = vpop.permute.xlu0 %1226  ;;  %1676 = vmatmul.mubr.msk.bf16.vlgmr.msra.gmra.mrb[0].mxu1 %vm355_vm4, %v1611_v6  ;;  %v1119_v39 = vsel %vm359_vm3, %v1108_v34, 0 }
  0xc0   : > { %1680 = vmatpush3.bf16.msra.mxu1 %v861_v14  ;;  %1681 = vmatprep.mubr.msk.bf16.mxu1 %vm1847_vm0, %v1845_v8 }
  0xc1   : > { %1685 = vmatprep.subr.bf16.mxu1 %v1845_v8  ;;  %v1229_v37 = vpop.permute.xlu1 %1228 }
  0xc2   : > { %v1235_v41 = vsel %vm1234_vm10, %v1227_v15, %v1229_v37 }
  0xc3   : > { %v1231_v17 = vpop.permute.xlu0 %1230  ;;  %v1242_v45 = vsel %vm359_vm3, %v1235_v41, 0 }
  0xc4   : > { %v1236_v38 = vsel %vm1234_vm10, %v1229_v37, %v1231_v17 }
  0xc5   : > { %v1233_v40 = vpop.permute.xlu1 %1232 }
  0xc6   : > { %v1237_v44 = vsel %vm1234_vm10, %v1231_v17, %v1233_v40 }
  0xc7   : > { %v1356_v20 = vpop.permute.xlu0 %1355  ;;  %v1248_v47 = vsel %vm359_vm3, %v1237_v44, 0 }
  0xc9   : > { %1617 = vmatmul.mubr.msk.bf16.vlgmr.msra.gmra.mrb[0].mxu0 %vm355_vm4, %v1615_v19  ;;  %v1358_v46 = vpop.permute.xlu1 %1357 }
  0xca   : > { %993 = vmatpush1.bf16.msra.mxu0 %v984_v23  ;;  %1024 = vmatprep.mubr.bf16.mxu0 %v1846_v9  ;;  %v1364_v50 = vsel %vm1363_vm11, %v1356_v20, %v1358_v46 }
  0xcb   : > { %1624 = vmatprep.subr.msk.bf16.mxu0 %vm359_vm3, %v1107_v25  ;;  %v1360_v27 = vpop.permute.xlu0 %1359  ;;  %1682 = vmatmul.mubr.msk.bf16.vlgmr.msra.gmra.mrb[0].mxu1 %vm355_vm4, %v1615_v19  ;;  %v1371_v53 = vsel %vm359_vm3, %v1364_v50, 0 }
  0xcc   : > { %1686 = vmatpush3.bf16.msra.mxu1 %v990_v26  ;;  %1687 = vmatprep.mubr.msk.bf16.mxu1 %vm1847_vm0, %v1845_v8  ;;  %v1365_v48 = vsel %vm1363_vm11, %v1358_v46, %v1360_v27 }
  0xcd   : > { %1691 = vmatprep.subr.bf16.mxu1 %v1845_v8  ;;  %v1362_v49 = vpop.permute.xlu1 %1361 }
  0xce   : > { %v1366_v52 = vsel %vm1363_vm11, %v1360_v27, %v1362_v49 }
  0xcf   : > { %v307_v29 = vpop.permute.xlu0 %306  ;;  %v1377_v54 = vsel %vm359_vm3, %v1366_v52, 0 }
  0xd0   : > { %v309_v30 = vsub.f32 %v1935_v21, %v307_v29 }
  0xd2   : > { %v310_v32 = vmax.f32 %v309_v30, 0.0 }
  0xd4   : > { %v311_v35 = vadd.f32 1e-05, %v310_v32 }
  0xd5   : > { %1621 = vmatmul.mubr.msk.bf16.vlgmr.msra.gmra.mrb[0].mxu0 %vm355_vm4, %v1619_v33 }
  0xd6   : > { %1818 = vrsqrt.f32 %v311_v35  ;;  %1122 = vmatpush1.bf16.msra.mxu0 %v1113_v36  ;;  %1153 = vmatprep.mubr.bf16.mxu0 %v1846_v9 }
  0xd7   : > { %1628 = vmatprep.subr.msk.bf16.mxu0 %vm359_vm3, %v1236_v38  ;;  %1688 = vmatmul.mubr.msk.bf16.vlgmr.msra.gmra.mrb[0].mxu1 %vm355_vm4, %v1619_v33 }
  0xd8   : > { %1692 = vmatpush3.bf16.msra.mxu1 %v1119_v39  ;;  %1693 = vmatprep.mubr.msk.bf16.mxu1 %vm1847_vm0, %v1845_v8 }
  0xd9   : > { %1697 = vmatprep.subr.bf16.mxu1 %v1845_v8 }
  0xe0   : > { %v1819_v43 = vpop.eup %1818 }
  0xe1   : > { %1464 = vperm.xlu0 %1813, %v1819_v43   ;;  %315 = vrot.lane.b32.xlu1 %v1819_v43, %s1848_s30 }
  0xe2   : > { %1625 = vmatmul.mubr.msk.bf16.vlgmr.msra.gmra.mrb[0].mxu0 %vm355_vm4, %v1623_v42 }
  0xe3   : > { %1251 = vmatpush1.bf16.msra.mxu0 %v1242_v45  ;;  %1694 = vmatmul.mubr.msk.bf16.vlgmr.msra.gmra.mrb[0].mxu1 %vm355_vm4, %v1623_v42 }
  0xe4   : > { %1632 = vmatprep.subr.msk.bf16.mxu0 %vm359_vm3, %v1365_v48  ;;  %1698 = vmatpush3.bf16.msra.mxu1 %v1248_v47 }
  0xe5   : > { %1282 = vmatprep.mubr.bf16.mxu0 %v1846_v9  ;;  %1699 = vmatprep.mubr.msk.bf16.mxu1 %vm1847_vm0, %v1845_v8 }
  0xe6   : > { %1703 = vmatprep.subr.bf16.mxu1 %v1845_v8  ;;  %1815 = vset.pattern.permute.xlu0 %v1846_v9 }
  0xee   : > { %1629 = vmatmul.mubr.msk.bf16.vlgmr.msra.gmra.mrb[0].mxu0 %vm355_vm4, %v1627_v51 }
  0xef   : > { %1380 = vmatpush1.bf16.msra.mxu0 %v1371_v53  ;;  %1700 = vmatmul.mubr.msk.bf16.vlgmr.msra.gmra.mrb[0].mxu1 %vm355_vm4, %v1627_v51 }
  0xf0   : > { %1704 = vmatpush3.bf16.msra.mxu1 %v1377_v54  ;;  %1411 = vmatprep.mubr.bf16.mxu0 %v1846_v9 }
  0xf1   : > { %1705 = vmatprep.mubr.msk.bf16.mxu1 %vm1847_vm0, %v1845_v8 }
  0xfa   : > { %1633 = vmatmul.mubr.msk.bf16.vlgmr.msra.gmra.mrb[0].mxu0 %vm355_vm4, %v1631_v55 }
  0xfb   : > { %1706 = vmatmul.mubr.msk.bf16.vlgmr.msra.gmra.mrb[0].mxu1 %vm355_vm4, %v1631_v55 }
 0x153   : > { %v316_v57 = vpop.permute.xlu1 %315 }
 0x154   : > { %v318_v58 = vmul.f32 %v316_v57, %v1935_v21 }
 0x156   : > { %v319_v9 = vsub.f32 %v313_v56, %v318_v58 }
 0x158   : > { %1472 = vperm.xlu1 %1814, %v319_v9  }
 0x160   : > { %v1465_v2 = vpop.permute.xlu0 %1464 }
 0x1cd   : > { %v1413_v59 = vpop.f32.mrb[0].mxu0 }
 0x1ce   : > { %v1415_v8 = vpop.f32.mrb[1].mxu0  ;;  %v1454_v60 = vpop.f32.mrb[0].mxu1  ;;  %v1467_v3 = vmul.f32 %v1465_v2, %v1413_v59 }
 0x1cf   : > { %v1417_v61 = vpop.f32.mrb[2].mxu0  ;;  %v1707_v62 = vpop.f32.mrb[1].mxu1  ;;  %v1468_v4 = vmul.f32 %v1465_v2, %v1415_v8  ;;  %v1469_v5 = vmul.f32 %v1465_v2, %v1454_v60 }
 0x1d0   : > { %v1418_v63 = vpop.f32.mrb[3].mxu0  ;;  %v1457_v0 = vpop.f32.mrb[2].mxu1 }
 0x1d1   : > { %v1708_v1 = vpop.f32.mrb[3].mxu1 }
 0x1d7   : > { %v1473_v6 = vpop.permute.xlu1 %1472 }
 0x1d8   : > { %v1475_v7 = vadd.f32 %v1473_v6, %v1467_v3  ;;  %v1476_v10 = vadd.f32 %v1473_v6, %v1468_v4  ;;  %v1477_v11 = vadd.f32 %v1473_v6, %v1469_v5 }
 0x1da   : > { %vm1478_vm12 = vcmp.ge.f32.partialorder %v1475_v7, 0.0  ;;  %vm1479_vm13 = vcmp.ge.f32.partialorder %v1476_v10, 0.0  ;;  %vm1480_vm14 = vcmp.ge.f32.partialorder %v1477_v11, 0.0  ;;  %v1481_v21 = vmul.f32 0.01, %v1475_v7 }
 0x1db   : > { %v1482_v12 = vmul.f32 0.01, %v1476_v10  ;;  %v1483_v13 = vmul.f32 0.01, %v1477_v11 }
 0x1dc   : > { %v1484_v14 = vsel %vm1478_vm12, %v1475_v7, %v1481_v21 }
 0x1dd   : > { %v1485_v15 = vsel %vm1479_vm13, %v1476_v10, %v1482_v12  ;;  %v1486_v16 = vsel %vm1480_vm14, %v1477_v11, %v1483_v13  ;;  %1487 = vst [vmem:[%s290_s24] sm:$0xff] %v1484_v14 }
 0x1de   : > { %1488 = vst [vmem:[%s290_s24 + $0x8] sm:$0xff] %v1485_v15  ;;  %1489 = vst [vmem:[%s290_s24 + $0x10] sm:$0xff] %v1486_v16 }
 0x1df PF: > { %s15_s20 = sadd.s32 1, %s1842_s20   ;;  %s2089_s18 = smov %s1838_s19 }
 0x1e0   : > { %p12_p5 = scmp.ge.s32.totalorder %s15_s20, 4   ;;  %s2090_s19 = smov %s2092_s21 }
 0x1e2   :  { %14 = sbr.rel (!%p12_p5) target bundleno = 2 (0x2), region = 81 }

// kernel: leaky_relu_bnns_conv2d.2
= control target key start
LH: loop header
LB: loop body
LE: loop exit
PB: predicated region body
PF: predicated region fallthrough
CT: control target
= control target key end

     0   :  { %s1851_s15 = smov 0   ;;  %s1853_s16 = smov 0   ;;  %s2036_s0 = inlined_call_operand.vmem [shape: bf16[2,1,4,384], index: 0, kind: input, shape index: {}]   ;;  %s2037_s1 = inlined_call_operand.vmem [shape: bf16[2,1,4,128], index: 1, kind: input, shape index: {}]   ;;  %s2038_s2 = inlined_call_operand.vmem [shape: bf16[9,8,4], index: 2, kind: input, shape index: {}]   ;;  %s2039_s3 = inlined_call_operand.vmem [shape: f32[1,384], index: 3, kind: input, shape index: {}]   ;;  %s2040_s4 = inlined_call_operand.vmem [shape: f32[2,1,8,2], index: 4, kind: output, shape index: {}]  }
   0x1   :  { %s1855_s17 = smov 0  }
   0x2 LB: > { %s26_s18 = sadd.s32 1, %s1808_s16  ;;  %p1574_p0 = scmp.ge.s32.totalorder %s1812_s17, 1  ;;  %s1812_s17 = sphi %s1855_s17, %s14_s17   ;;  %s1808_s16 = sphi %s1853_s16, %s2042_s16   ;;  %s1804_s15 = sphi %s1851_s15, %s2041_s15  }
   0x3   : > { %p28_p1 = scmp.ge.s32.totalorder %s26_s18, 2  ;;  %p207_p2 = scmp.lt.s32.totalorder %s1812_s17, 3 }
   0x5   : > { %s2044_s18 = smov (%p28_p1, %s26_s18), 0  ;;  %p208_p3 = pnand %p1574_p0, %p207_p2 }
   0x6   : > { %p251_p4 = scmp.lt.s32.totalorder (!%p208_p3), %s1804_s15, 1  ;;  %v1814_v0 = vmov (!%p208_p3), 1983009808   ;;  %v294_v2 = vlaneseq (!%p208_p3)  ;;  %v1815_v8 = vmov (!%p208_p3), 0.0   ;;  %v1816_v9 = vmov (!%p208_p3), 0   ;;  %s1818_s27 = smov (!%p208_p3), 127  }
   0x7   : > { %211 = sbr.rel (%p208_p3) target bundleno = 613 (0x265), region = 36  ;;  %v292_v1 = vunpack.c.l.s4 (!%p208_p3), %v1814_v0  ;;  %1633 = vmatprep.subr.bf16.mxu1 (!%p208_p3), %v1815_v8  ;;  %365 = vmatprep.mubr.bf16.mxu0 (!%p208_p3), %v1816_v9  ;;  %vm1817_vm0 = vmmov (!%p208_p3), 0   ;;  %s1819_s28 = smov (!%p208_p3), 126   ;;  %vm315_vm1 = vcmask (!%p208_p3), 1039360   ;;  %vm323_vm2 = vcmask (!%p208_p3), 1041408  }
   0x8   : > { %v1879_v6 = vshrl.u32 (!%p208_p3), %v294_v2, 7  ;;  %1635 = vmatprep.mubr.msk.bf16.mxu1 (!%p208_p3), %vm1817_vm0, %v1815_v8  ;;  %s1820_s29 = smov (!%p208_p3), 110   ;;  %s1821_s30 = smov (!%p208_p3), 109   ;;  %v1578_v29 = vld [vmem:[%s2038_s2 + $0x4] sm:$0xf] (!%p208_p3)  ;;  %vm319_vm3 = vcmask (!%p208_p3), 31744  }
   0x9   : > { %v293_v5 = vunpack.c.0.s8 (!%p208_p3), %v292_v1  ;;  %s1822_s5 = smov (!%p208_p3), 108   ;;  %s1823_s6 = smov (!%p208_p3), 92   ;;  %vm553_vm4 = vcmask (!%p208_p3), 1031168   ;;  %vm682_vm5 = vcmask (!%p208_p3), 900096   ;;  %v285_v42 = vld [vmem:[%s2038_s2] sm:$0xf] (!%p208_p3) }
   0xa   : > { %s1824_s7 = smov (!%p208_p3), 91   ;;  %s1825_s8 = smov (!%p208_p3), 90   ;;  %vm811_vm6 = vcmask (!%p208_p3), 891904   ;;  %v1585_v53 = vld [vmem:[%s2038_s2 + $0x8] sm:$0xf] (!%p208_p3)  ;;  %vm940_vm7 = vcmask (!%p208_p3), 883712  }
   0xb   : > { %v1882_v7 = vsub.s32 (!%p208_p3), %v293_v5, %v1879_v6  ;;  %v1589_v63 = vld [vmem:[%s2038_s2 + $0xc] sm:$0xf] (!%p208_p3)  ;;  %vm1069_vm8 = vcmask (!%p208_p3), 752640   ;;  %vm1198_vm9 = vcmask (!%p208_p3), 744448   ;;  %vm1327_vm10 = vcmask (!%p208_p3), 736256  }
   0xc   : > { %vm1460_vm11 = vcmask (!%p208_p3), 7168   ;;  %vm1462_vm12 = vcmask (!%p208_p3), 15368  }
   0xe   : > { %s2046_s15 = smov (!%p251_p4, %s1804_s15), 1 }
   0xf   : > { %s1751_s19 = smul.u32 6, %s2046_s15  ;;  %s1576_s20 = sshll.u32 %s2046_s15, 1 }
  0x10   : > { %s266_s23 = scalar_lea.vmem %s2037_s1, %s1576_s20 }
  0x11   : > { %s258_s26 = scalar_lea.vmem %s2036_s0, %s1751_s19  ;;  %v282_v3 = vld [vmem:[%s266_s23] sm:$0x3] }
  0x12   : > { %v280_v4 = vld [vmem:[%s258_s26] sm:$0x3f]  ;;  %283 = vst [vmem:[#allocation2 + $0x6] sm:$0x3] %v282_v3 }
  0x13   : > { %281 = vst [vmem:[#allocation2] sm:$0x3f] %v280_v4 }
  0x1a   : > { %v286_v10 = vld [vmem:[#allocation2] sm:$0xff] }
  0x1b   : > { %v297_v11 = vrot.slane %v286_v10, %v1882_v7  ;;  %v290_v12 = vcombine.high %v286_v10, %v286_v10  ;;  %v284_v16 = vld [vmem:[#allocation2] sm:$0x3f] }
  0x1c   : > { %v422_v18 = vrot.slane %v284_v16, %v1882_v7  ;;  %v415_v20 = vcombine.high %v284_v16, %v284_v16 }
  0x1d   : > { %307 = vrot.lane.b32.xlu0 %v297_v11, %s1818_s27  ;;  %v305_v13 = vcombine.high %v297_v11, %v297_v11  ;;  %v304_v14 = vrot.slane %v290_v12, %v1882_v7  ;;  %v1593_v12 = vld [vmem:[%s2038_s2 + $0x10] sm:$0xf] }
  0x1e   : > { %v430_v22 = vcombine.high %v422_v18, %v422_v18  ;;  %v429_v27 = vrot.slane %v415_v20, %v1882_v7  ;;  %v435_v31 = vsel %vm323_vm2, %v422_v18, 0 }
  0x1f   : > { %311 = vrot.lane.b32.xlu1 %v304_v14, %s1818_s27  ;;  %v306_v15 = vcombine.high %v304_v14, %v304_v14 }
  0x20   : > { %v441_v33 = vsel %vm323_vm2, %v429_v27, 0 }
  0x21   : > { %309 = vrot.lane.b32.xlu0 %v305_v13, %s1818_s27 }
  0x23   : > { %313 = vrot.lane.b32.xlu1 %v306_v15, %s1818_s27 }
  0x25   : > { %545 = vrot.lane.b32.xlu0 %v297_v11, %s1819_s28 }
  0x27   : > { %547 = vrot.lane.b32.xlu1 %v305_v13, %s1819_s28 }
  0x29   : > { %549 = vrot.lane.b32.xlu0 %v304_v14, %s1819_s28 }
  0x2b   : > { %551 = vrot.lane.b32.xlu1 %v306_v15, %s1819_s28 }
  0x2d   : > { %674 = vrot.lane.b32.xlu0 %v297_v11, %s1820_s29 }
  0x2f   : > { %676 = vrot.lane.b32.xlu1 %v305_v13, %s1820_s29 }
  0x31   : > { %678 = vrot.lane.b32.xlu0 %v304_v14, %s1820_s29 }
  0x33   : > { %680 = vrot.lane.b32.xlu1 %v306_v15, %s1820_s29 }
  0x35   : > { %803 = vrot.lane.b32.xlu0 %v297_v11, %s1821_s30 }
  0x37   : > { %805 = vrot.lane.b32.xlu1 %v305_v13, %s1821_s30 }
  0x39   : > { %807 = vrot.lane.b32.xlu0 %v304_v14, %s1821_s30 }
  0x3b   : > { %809 = vrot.lane.b32.xlu1 %v306_v15, %s1821_s30 }
  0x3d   : > { %932 = vrot.lane.b32.xlu0 %v297_v11, %s1822_s5 }
  0x3f   : > { %934 = vrot.lane.b32.xlu1 %v305_v13, %s1822_s5 }
  0x41   : > { %936 = vrot.lane.b32.xlu0 %v304_v14, %s1822_s5 }
  0x43   : > { %938 = vrot.lane.b32.xlu1 %v306_v15, %s1822_s5 }
  0x45   : > { %1061 = vrot.lane.b32.xlu0 %v297_v11, %s1823_s6 }
  0x47   : > { %1063 = vrot.lane.b32.xlu1 %v305_v13, %s1823_s6 }
  0x49   : > { %1065 = vrot.lane.b32.xlu0 %v304_v14, %s1823_s6 }
  0x4b   : > { %1067 = vrot.lane.b32.xlu1 %v306_v15, %s1823_s6 }
  0x4d   : > { %1190 = vrot.lane.b32.xlu0 %v297_v11, %s1824_s7 }
  0x4f   : > { %1192 = vrot.lane.b32.xlu1 %v305_v13, %s1824_s7 }
  0x51   : > { %1194 = vrot.lane.b32.xlu0 %v304_v14, %s1824_s7 }
  0x53   : > { %1196 = vrot.lane.b32.xlu1 %v306_v15, %s1824_s7  ;;  %s1577_s7 = sshll.u32 %s2046_s15, 3 }
  0x54   : > { %s278_s10 = scalar_lea.vmem %s2040_s4, %s1577_s7 }
  0x55   : > { %1319 = vrot.lane.b32.xlu0 %v297_v11, %s1825_s8 }
  0x57   : > { %1321 = vrot.lane.b32.xlu1 %v305_v13, %s1825_s8 }
  0x59   : > { %1323 = vrot.lane.b32.xlu0 %v304_v14, %s1825_s8 }
  0x5b   : > { %1325 = vrot.lane.b32.xlu1 %v306_v15, %s1825_s8 }
  0x8f   : > { %v308_v17 = vpop.permute.xlu0 %307 }
  0x91   : > { %v312_v19 = vpop.permute.xlu1 %311 }
  0x93   : > { %v310_v21 = vpop.permute.xlu0 %309 }
  0x94   : > { %v317_v23 = vsel %vm315_vm1, %v310_v21, %v312_v19  ;;  %v316_v24 = vsel %vm315_vm1, %v308_v17, %v310_v21 }
  0x95   : > { %1579 = vmatprep.subr.msk.bf16.mxu0 %vm323_vm2, %v317_v23  ;;  %v314_v25 = vpop.permute.xlu1 %313  ;;  %v325_v26 = vsel %vm323_vm2, %v316_v24, 0 }
  0x96   : > { %334 = vmatpush1.bf16.msra.mxu0 %v325_v26  ;;  %v318_v28 = vsel %vm315_vm1, %v312_v19, %v314_v25 }
  0x97   : > { %v331_v30 = vsel %vm323_vm2, %v318_v28, 0  ;;  %1582 = vmatprep.subr.msk.bf16.mxu0 %vm323_vm2, %v430_v22  ;;  %v546_v32 = vpop.permute.xlu0 %545  ;;  %v1597_v22 = vld [vmem:[%s2038_s2 + $0x14] sm:$0xf] }
  0x98   : > { %1634 = vmatpush3.bf16.msra.mxu1 %v331_v30 }
  0x99   : > { %1580 = vmatmul.mubr.msk.bf16.vlgmr.msra.gmra.mrb[0].mxu0 %vm319_vm3, %v1578_v29  ;;  %1639 = vmatprep.subr.bf16.mxu1 %v1815_v8  ;;  %v548_v34 = vpop.permute.xlu1 %547 }
  0x9a   : > { %444 = vmatpush1.bf16.msra.mxu0 %v435_v31  ;;  %475 = vmatprep.mubr.bf16.mxu0 %v1816_v9  ;;  %v554_v39 = vsel %vm553_vm4, %v546_v32, %v548_v34  ;;  %v1601_v32 = vld [vmem:[%s2038_s2 + $0x18] sm:$0xf] }
  0x9b   : > { %1636 = vmatmul.mubr.msk.bf16.vlgmr.msra.gmra.mrb[0].mxu1 %vm319_vm3, %v1578_v29  ;;  %v550_v35 = vpop.permute.xlu0 %549  ;;  %v561_v43 = vsel %vm323_vm2, %v554_v39, 0  ;;  %v1605_v39 = vld [vmem:[%s2038_s2 + $0x1c] sm:$0xf] }
  0x9c   : > { %1640 = vmatpush3.bf16.msra.mxu1 %v441_v33  ;;  %v555_v36 = vsel %vm553_vm4, %v548_v34, %v550_v35  ;;  %1641 = vmatprep.mubr.msk.bf16.mxu1 %vm1817_vm0, %v1815_v8 }
  0x9d   : > { %v552_v37 = vpop.permute.xlu1 %551  ;;  %1586 = vmatprep.subr.msk.bf16.mxu0 %vm323_vm2, %v555_v36  ;;  %1645 = vmatprep.subr.bf16.mxu1 %v1815_v8 }
  0x9e   : > { %v556_v41 = vsel %vm553_vm4, %v550_v35, %v552_v37 }
  0x9f   : > { %v675_v38 = vpop.permute.xlu0 %674  ;;  %v567_v46 = vsel %vm323_vm2, %v556_v41, 0 }
  0xa1   : > { %v677_v40 = vpop.permute.xlu1 %676 }
  0xa2   : > { %v683_v49 = vsel %vm682_vm5, %v675_v38, %v677_v40 }
  0xa3   : > { %v679_v44 = vpop.permute.xlu0 %678  ;;  %v690_v54 = vsel %vm323_vm2, %v683_v49, 0 }
  0xa4   : > { %v684_v45 = vsel %vm682_vm5, %v677_v40, %v679_v44 }
  0xa5   : > { %1583 = vmatmul.mubr.msk.bf16.vlgmr.msra.gmra.mrb[0].mxu0 %vm319_vm3, %v285_v42  ;;  %v681_v48 = vpop.permute.xlu1 %680 }
  0xa6   : > { %570 = vmatpush1.bf16.msra.mxu0 %v561_v43  ;;  %601 = vmatprep.mubr.bf16.mxu0 %v1816_v9  ;;  %v685_v52 = vsel %vm682_vm5, %v679_v44, %v681_v48  ;;  %v1431_v43 = vsub.s32 0, %v1879_v6  ;;  %v1435_v44 = vsub.s32 1, %v1879_v6 }
  0xa7   : > { %1642 = vmatmul.mubr.msk.bf16.vlgmr.msra.gmra.mrb[0].mxu1 %vm319_vm3, %v285_v42  ;;  %1590 = vmatprep.subr.msk.bf16.mxu0 %vm323_vm2, %v684_v45  ;;  %v804_v47 = vpop.permute.xlu0 %803  ;;  %v696_v56 = vsel %vm323_vm2, %v685_v52, 0  ;;  %v1609_v42 = vld [vmem:[%s2038_s2 + $0x20] sm:$0xf]  ;;  %v1439_v45 = vsub.s32 2, %v1879_v6 }
  0xa8   : > { %1646 = vmatpush3.bf16.msra.mxu1 %v567_v46  ;;  %1647 = vmatprep.mubr.msk.bf16.mxu1 %vm1817_vm0, %v1815_v8 }
  0xa9   : > { %1651 = vmatprep.subr.bf16.mxu1 %v1815_v8  ;;  %v806_v50 = vpop.permute.xlu1 %805 }
  0xaa   : > { %v812_v59 = vsel %vm811_vm6, %v804_v47, %v806_v50 }
  0xab   : > { %v808_v51 = vpop.permute.xlu0 %807  ;;  %v819_v0 = vsel %vm323_vm2, %v812_v59, 0 }
  0xac   : > { %v813_v55 = vsel %vm811_vm6, %v806_v50, %v808_v51 }
  0xad   : > { %v810_v58 = vpop.permute.xlu1 %809 }
  0xae   : > { %v814_v62 = vsel %vm811_vm6, %v808_v51, %v810_v58 }
  0xaf   : > { %v933_v57 = vpop.permute.xlu0 %932  ;;  %v825_v2 = vsel %vm323_vm2, %v814_v62, 0 }
  0xb1   : > { %1587 = vmatmul.mubr.msk.bf16.vlgmr.msra.gmra.mrb[0].mxu0 %vm319_vm3, %v1585_v53  ;;  %v935_v60 = vpop.permute.xlu1 %934 }
  0xb2   : > { %699 = vmatpush1.bf16.msra.mxu0 %v690_v54  ;;  %730 = vmatprep.mubr.bf16.mxu0 %v1816_v9  ;;  %v941_v5 = vsel %vm940_vm7, %v933_v57, %v935_v60 }
  0xb3   : > { %1648 = vmatmul.mubr.msk.bf16.vlgmr.msra.gmra.mrb[0].mxu1 %vm319_vm3, %v1585_v53  ;;  %1594 = vmatprep.subr.msk.bf16.mxu0 %vm323_vm2, %v813_v55  ;;  %v937_v61 = vpop.permute.xlu0 %936  ;;  %v948_v13 = vsel %vm323_vm2, %v941_v5, 0 }
  0xb4   : > { %1652 = vmatpush3.bf16.msra.mxu1 %v696_v56  ;;  %1653 = vmatprep.mubr.msk.bf16.mxu1 %vm1817_vm0, %v1815_v8  ;;  %v942_v1 = vsel %vm940_vm7, %v935_v60, %v937_v61 }
  0xb5   : > { %1657 = vmatprep.subr.bf16.mxu1 %v1815_v8  ;;  %v939_v4 = vpop.permute.xlu1 %938 }
  0xb6   : > { %v943_v11 = vsel %vm940_vm7, %v937_v61, %v939_v4 }
  0xb7   : > { %v1062_v3 = vpop.permute.xlu0 %1061  ;;  %v954_v15 = vsel %vm323_vm2, %v943_v11, 0 }
  0xb9   : > { %v1064_v7 = vpop.permute.xlu1 %1063 }
  0xba   : > { %v1070_v18 = vsel %vm1069_vm8, %v1062_v3, %v1064_v7 }
  0xbb   : > { %v1066_v10 = vpop.permute.xlu0 %1065  ;;  %v1077_v23 = vsel %vm323_vm2, %v1070_v18, 0 }
  0xbc   : > { %v1071_v14 = vsel %vm1069_vm8, %v1064_v7, %v1066_v10 }
  0xbd   : > { %1591 = vmatmul.mubr.msk.bf16.vlgmr.msra.gmra.mrb[0].mxu0 %vm319_vm3, %v1589_v63  ;;  %v1068_v17 = vpop.permute.xlu1 %1067 }
  0xbe   : > { %828 = vmatpush1.bf16.msra.mxu0 %v819_v0  ;;  %859 = vmatprep.mubr.bf16.mxu0 %v1816_v9  ;;  %v1072_v21 = vsel %vm1069_vm8, %v1066_v10, %v1068_v17 }
  0xbf   : > { %1654 = vmatmul.mubr.msk.bf16.vlgmr.msra.gmra.mrb[0].mxu1 %vm319_vm3, %v1589_v63  ;;  %1598 = vmatprep.subr.msk.bf16.mxu0 %vm323_vm2, %v942_v1  ;;  %v1191_v16 = vpop.permute.xlu0 %1190  ;;  %v1083_v25 = vsel %vm323_vm2, %v1072_v21, 0 }
  0xc0   : > { %1658 = vmatpush3.bf16.msra.mxu1 %v825_v2  ;;  %1659 = vmatprep.mubr.msk.bf16.mxu1 %vm1817_vm0, %v1815_v8 }
  0xc1   : > { %1663 = vmatprep.subr.bf16.mxu1 %v1815_v8  ;;  %v1193_v19 = vpop.permute.xlu1 %1192 }
  0xc2   : > { %v1199_v28 = vsel %vm1198_vm9, %v1191_v16, %v1193_v19 }
  0xc3   : > { %v1195_v20 = vpop.permute.xlu0 %1194  ;;  %v1206_v33 = vsel %vm323_vm2, %v1199_v28, 0 }
  0xc4   : > { %v1200_v24 = vsel %vm1198_vm9, %v1193_v19, %v1195_v20 }
  0xc5   : > { %v1197_v27 = vpop.permute.xlu1 %1196 }
  0xc6   : > { %v1201_v31 = vsel %vm1198_vm9, %v1195_v20, %v1197_v27 }
  0xc7   : > { %v1320_v26 = vpop.permute.xlu0 %1319  ;;  %v1212_v35 = vsel %vm323_vm2, %v1201_v31, 0 }
  0xc9   : > { %1595 = vmatmul.mubr.msk.bf16.vlgmr.msra.gmra.mrb[0].mxu0 %vm319_vm3, %v1593_v12  ;;  %v1322_v29 = vpop.permute.xlu1 %1321 }
  0xca   : > { %957 = vmatpush1.bf16.msra.mxu0 %v948_v13  ;;  %988 = vmatprep.mubr.bf16.mxu0 %v1816_v9  ;;  %v1328_v37 = vsel %vm1327_vm10, %v1320_v26, %v1322_v29 }
  0xcb   : > { %1660 = vmatmul.mubr.msk.bf16.vlgmr.msra.gmra.mrb[0].mxu1 %vm319_vm3, %v1593_v12  ;;  %1602 = vmatprep.subr.msk.bf16.mxu0 %vm323_vm2, %v1071_v14  ;;  %v1324_v30 = vpop.permute.xlu0 %1323  ;;  %v1335_v40 = vsel %vm323_vm2, %v1328_v37, 0 }
  0xcc   : > { %1664 = vmatpush3.bf16.msra.mxu1 %v954_v15  ;;  %1665 = vmatprep.mubr.msk.bf16.mxu1 %vm1817_vm0, %v1815_v8  ;;  %v1329_v34 = vsel %vm1327_vm10, %v1322_v29, %v1324_v30 }
  0xcd   : > { %1669 = vmatprep.subr.bf16.mxu1 %v1815_v8  ;;  %v1326_v36 = vpop.permute.xlu1 %1325 }
  0xce   : > { %v1330_v38 = vsel %vm1327_vm10, %v1324_v30, %v1326_v36 }
  0xcf   : > { %v1341_v41 = vsel %vm323_vm2, %v1330_v38, 0 }
  0xd5   : > { %1599 = vmatmul.mubr.msk.bf16.vlgmr.msra.gmra.mrb[0].mxu0 %vm319_vm3, %v1597_v22 }
  0xd6   : > { %1086 = vmatpush1.bf16.msra.mxu0 %v1077_v23  ;;  %1117 = vmatprep.mubr.bf16.mxu0 %v1816_v9 }
  0xd7   : > { %1666 = vmatmul.mubr.msk.bf16.vlgmr.msra.gmra.mrb[0].mxu1 %vm319_vm3, %v1597_v22  ;;  %1606 = vmatprep.subr.msk.bf16.mxu0 %vm323_vm2, %v1200_v24 }
  0xd8   : > { %1670 = vmatpush3.bf16.msra.mxu1 %v1083_v25  ;;  %1671 = vmatprep.mubr.msk.bf16.mxu1 %vm1817_vm0, %v1815_v8 }
  0xd9   : > { %1675 = vmatprep.subr.bf16.mxu1 %v1815_v8 }
  0xe1   : > { %1603 = vmatmul.mubr.msk.bf16.vlgmr.msra.gmra.mrb[0].mxu0 %vm319_vm3, %v1601_v32 }
  0xe2   : > { %1215 = vmatpush1.bf16.msra.mxu0 %v1206_v33  ;;  %1246 = vmatprep.mubr.bf16.mxu0 %v1816_v9 }
  0xe3   : > { %1672 = vmatmul.mubr.msk.bf16.vlgmr.msra.gmra.mrb[0].mxu1 %vm319_vm3, %v1601_v32  ;;  %1610 = vmatprep.subr.msk.bf16.mxu0 %vm323_vm2, %v1329_v34 }
  0xe4   : > { %1676 = vmatpush3.bf16.msra.mxu1 %v1212_v35  ;;  %1677 = vmatprep.mubr.msk.bf16.mxu1 %vm1817_vm0, %v1815_v8 }
  0xe5   : > { %1681 = vmatprep.subr.bf16.mxu1 %v1815_v8 }
  0xed   : > { %1607 = vmatmul.mubr.msk.bf16.vlgmr.msra.gmra.mrb[0].mxu0 %vm319_vm3, %v1605_v39 }
  0xee   : > { %1344 = vmatpush1.bf16.msra.mxu0 %v1335_v40  ;;  %1375 = vmatprep.mubr.bf16.mxu0 %v1816_v9  ;;  %v1427_v9 = vld [vmem:[%s2039_s3] sm:$0x7] }
  0xef   : > { %1678 = vmatmul.mubr.msk.bf16.vlgmr.msra.gmra.mrb[0].mxu1 %vm319_vm3, %v1605_v39  ;;  %v1432_v46 = vrot.slane %v1427_v9, %v1431_v43  ;;  %v1440_v47 = vrot.slane %v1427_v9, %v1439_v45 }
  0xf0   : > { %1682 = vmatpush3.bf16.msra.mxu1 %v1341_v41  ;;  %1683 = vmatprep.mubr.msk.bf16.mxu1 %vm1817_vm0, %v1815_v8  ;;  %v1436_v8 = vrot.slane %v1427_v9, %v1435_v44 }
  0xf9   : > { %1611 = vmatmul.mubr.msk.bf16.vlgmr.msra.gmra.mrb[0].mxu0 %vm319_vm3, %v1609_v42 }
  0xfb   : > { %1684 = vmatmul.mubr.msk.bf16.vlgmr.msra.gmra.mrb[0].mxu1 %vm319_vm3, %v1609_v42 }
 0x1cc   : > { %v1377_v48 = vpop.f32.mrb[0].mxu0 }
 0x1cd   : > { %v1444_v49 = vmul.f32 %v1432_v46, %v1377_v48  ;;  %v1379_v50 = vpop.f32.mrb[1].mxu0 }
 0x1ce   : > { %v1445_v51 = vmul.f32 %v1436_v8, %v1379_v50  ;;  %v1381_v52 = vpop.f32.mrb[2].mxu0  ;;  %v1418_v53 = vpop.f32.mrb[0].mxu1 }
 0x1cf   : > { %v1452_v54 = vmul.f32 %v1444_v49, %v1377_v48  ;;  %v1446_v55 = vmul.f32 %v1440_v47, %v1418_v53  ;;  %v1382_v56 = vpop.f32.mrb[3].mxu0  ;;  %v1685_v57 = vpop.f32.mrb[1].mxu1 }
 0x1d0   : > { %v1453_v58 = vmul.f32 %v1445_v51, %v1379_v50  ;;  %v1421_v59 = vpop.f32.mrb[2].mxu1  ;;  %v1447_v60 = vadd.f32 %v1445_v51, %v1444_v49 }
 0x1d1   : > { %v1454_v61 = vmul.f32 %v1446_v55, %v1418_v53  ;;  %v1686_v62 = vpop.f32.mrb[3].mxu1 }
 0x1d2   : > { %v1448_v6 = vadd.f32 %v1447_v60, %v1446_v55  ;;  %v1455_v63 = vadd.f32 %v1453_v58, %v1452_v54 }
 0x1d4   : > { %1449 = vadd.xlane.f32.xlu0 %v1448_v6  ;;  %v1456_v0 = vadd.f32 %v1455_v63, %v1454_v61 }
 0x1d6   : > { %1457 = vadd.xlane.f32.xlu1 %v1456_v0 }
 0x261   : > { %v1450_v1 = vpop.xlane.xlu0 %1449 }
 0x262   : > { %1461 = vst.msk [vmem:[%s278_s10] sm:$0xff] %vm1460_vm11, %v1450_v1 }
 0x263   : > { %v1458_v2 = vpop.xlane.xlu1 %1457 }
 0x264   : > { %1463 = vst.msk [vmem:[%s278_s10] sm:$0xff] %vm1462_vm12, %v1458_v2 }
 0x265 PF: > { %s14_s17 = sadd.s32 1, %s1812_s17   ;;  %s2041_s15 = smov %s1808_s16 }
 0x266   : > { %p11_p5 = scmp.ge.s32.totalorder %s14_s17, 4   ;;  %s2042_s16 = smov %s2044_s18 }
 0x268   :  { %13 = sbr.rel (!%p11_p5) target bundleno = 2 (0x2), region = 80 }

</bundles_post_ra>
